<compile_context>
chip_gen: v5e
topology: v5e:2x2
jax: 0.10.0
libtpu: 0.0.40
codegen_flags: <defaults>
</compile_context>

<pallas_src>
import math
import functools

import jax
import jax.numpy as jnp
from jax import lax
from jax.experimental import pallas as pl
from jax.experimental.pallas import tpu as pltpu

# ----- synthetic RoBERTa config -----
VOCAB = 100
HIDDEN = 32
HEADS = 2
HEAD_DIM = HIDDEN // HEADS
LAYERS = 2
INTERMEDIATE = 64
MAX_POS = 64
TYPE_VOCAB = 1
PAD_ID = 1
N_OUTPUTS = 6
N_OUT_PAD = 128            # lane-dense padded head width
LN_EPS = 1e-5
MASK_BIAS = -1e9


# ---------------- fused Pallas kernel ----------------

def _ln(x, g, b):
    mu = jnp.mean(x, axis=-1, keepdims=True)
    xc = x - mu
    var = jnp.mean(xc * xc, axis=-1, keepdims=True)
    return xc * lax.rsqrt(var + LN_EPS) * g + b


def _fused_model_kernel(emb_ref, bias_ref, eg_ref, eb_ref,
                        wqkv_ref, bqkv_ref, wo_ref, bo_ref,
                        ln1g_ref, ln1b_ref, wi_ref, bi_ref,
                        wo2_ref, bo2_ref, ln2g_ref, ln2b_ref,
                        ow_ref, ob_ref,
                        o_ref, ctx_ref, *, batch, seq):
    bias = bias_ref[...]                                   # (B, S) additive mask bias
    h = _ln(emb_ref[...], eg_ref[...], eb_ref[...])        # (B*S, H) embedding LN
    # embedding dropout(p=0.1) -> identity (eval mode)

    for l in range(LAYERS):                                # static, unrolled
        # fused Q|K|V projection (1/sqrt(Dh) pre-folded into Q slice of wqkv)
        qkv = jnp.dot(h, wqkv_ref[l], preferred_element_type=jnp.float32) + bqkv_ref[l]
        q = qkv[:, 0 * HIDDEN:1 * HIDDEN]
        k = qkv[:, 1 * HIDDEN:2 * HIDDEN]
        v = qkv[:, 2 * HIDDEN:3 * HIDDEN]

        # attention: static loops over (batch, head), row-major head slices
        for b in range(batch):
            bias_b = bias[b:b + 1, :]                      # (1, S)
            r0, r1 = b * seq, (b + 1) * seq
            for hh in range(HEADS):
                c0, c1 = hh * HEAD_DIM, (hh + 1) * HEAD_DIM
                qb = q[r0:r1, c0:c1]                       # (S, Dh)
                kb = k[r0:r1, c0:c1]
                vb = v[r0:r1, c0:c1]
                s = lax.dot_general(qb, kb, (((1,), (1,)), ((), ())),
                                    preferred_element_type=jnp.float32)   # (S, S)
                s = s + bias_b                             # HF-style additive mask
                s = s - jnp.max(s, axis=-1, keepdims=True)
                p = jnp.exp(s)
                p = p * pl.reciprocal(jnp.sum(p, axis=-1, keepdims=True), approx=True)
                ctx_ref[r0:r1, c0:c1] = jnp.dot(p, vb,
                                                preferred_element_type=jnp.float32)

        # output projection + fused residual + LayerNorm
        attn_out = (jnp.dot(ctx_ref[...], wo_ref[l],
                            preferred_element_type=jnp.float32) + bo_ref[l])
        h = _ln(h + attn_out, ln1g_ref[l], ln1b_ref[l])

        # FFN (GELU) + fused residual + LayerNorm
        ffn = jnp.dot(h, wi_ref[l], preferred_element_type=jnp.float32) + bi_ref[l]
        # TODO(synk): HF RoBERTa default hidden_act is erf-gelu; tanh approx used
        # here for Mosaic-safe lowering.
        ffn = jax.nn.gelu(ffn, approximate=True)
        ffn = jnp.dot(ffn, wo2_ref[l], preferred_element_type=jnp.float32) + bo2_ref[l]
        h = _ln(h + ffn, ln2g_ref[l], ln2b_ref[l])

    # [CLS] pooling (row b*S) + dropout(identity) + lane-dense classification head
    for b in range(batch):
        cls = h[b * seq:b * seq + 1, :]                    # (1, H)
        o_ref[b:b + 1, :] = (jnp.dot(cls, ow_ref[...],
                                     preferred_element_type=jnp.float32)
                             + ob_ref[...])


# ---------------- parameters ----------------

def _dense_init(key, din, dout):
    kw, _ = jax.random.split(key)
    w = jax.random.normal(kw, (din, dout), jnp.float32) * 0.02
    b = jnp.zeros((dout,), jnp.float32)
    return (w, b)


def init_params(key):
    keys = jax.random.split(key, LAYERS + 4)
    params = {
        "word_emb": jax.random.normal(keys[0], (VOCAB, HIDDEN), jnp.float32) * 0.02,
        "pos_emb": jax.random.normal(keys[1], (MAX_POS, HIDDEN), jnp.float32) * 0.02,
        "type_emb": jax.random.normal(keys[2], (TYPE_VOCAB, HIDDEN), jnp.float32) * 0.02,
        "emb_ln_g": jnp.ones((HIDDEN,), jnp.float32),
        "emb_ln_b": jnp.zeros((HIDDEN,), jnp.float32),
        "layers": [],
    }
    for i in range(LAYERS):
        ks = jax.random.split(keys[3 + i], 6)
        params["layers"].append({
            "wq": _dense_init(ks[0], HIDDEN, HIDDEN),
            "wk": _dense_init(ks[1], HIDDEN, HIDDEN),
            "wv": _dense_init(ks[2], HIDDEN, HIDDEN),
            "wo": _dense_init(ks[3], HIDDEN, HIDDEN),
            "ln1": (jnp.ones((HIDDEN,), jnp.float32), jnp.zeros((HIDDEN,), jnp.float32)),
            "wi": _dense_init(ks[4], HIDDEN, INTERMEDIATE),
            "wo2": _dense_init(ks[5], INTERMEDIATE, HIDDEN),
            "ln2": (jnp.ones((HIDDEN,), jnp.float32), jnp.zeros((HIDDEN,), jnp.float32)),
        })
    params["out"] = _dense_init(keys[3 + LAYERS], HIDDEN, N_OUTPUTS)
    return params


def fuse_params(params):
    """Build kernel-ready fused / stacked weights (done once, outside the kernel)."""
    scale = 1.0 / math.sqrt(HEAD_DIM)
    stk = {k: [] for k in ("wqkv", "bqkv", "wo", "bo", "ln1_g", "ln1_b",
                           "wi", "bi", "wo2", "bo2", "ln2_g", "ln2_b")}
    for lp in params["layers"]:
        wq, bq = lp["wq"]
        wk, bk = lp["wk"]
        wv, bv = lp["wv"]
        # fold attention scale into the Q projection
        stk["wqkv"].append(jnp.concatenate([wq * scale, wk, wv], axis=1))
        stk["bqkv"].append(jnp.concatenate([bq * scale, bk, bv]).reshape(1, 3 * HIDDEN))
        stk["wo"].append(lp["wo"][0])
        stk["bo"].append(lp["wo"][1].reshape(1, HIDDEN))
        stk["ln1_g"].append(lp["ln1"][0].reshape(1, HIDDEN))
        stk["ln1_b"].append(lp["ln1"][1].reshape(1, HIDDEN))
        stk["wi"].append(lp["wi"][0])
        stk["bi"].append(lp["wi"][1].reshape(1, INTERMEDIATE))
        stk["wo2"].append(lp["wo2"][0])
        stk["bo2"].append(lp["wo2"][1].reshape(1, HIDDEN))
        stk["ln2_g"].append(lp["ln2"][0].reshape(1, HIDDEN))
        stk["ln2_b"].append(lp["ln2"][1].reshape(1, HIDDEN))
    fused = {k: jnp.stack(v, axis=0) for k, v in stk.items()}
    fused["emb_ln_g"] = params["emb_ln_g"].reshape(1, HIDDEN)
    fused["emb_ln_b"] = params["emb_ln_b"].reshape(1, HIDDEN)
    ow, ob = params["out"]
    # lane-dense (128-wide) padded head
    fused["out_w"] = jnp.zeros((HIDDEN, N_OUT_PAD), jnp.float32).at[:, :N_OUTPUTS].set(ow)
    fused["out_b"] = jnp.zeros((1, N_OUT_PAD), jnp.float32).at[:, :N_OUTPUTS].set(ob)
    return fused


# ---------------- forward ----------------

def _position_ids(attention_mask):
    # HF RoBERTa: positions = cumsum(mask)*mask + padding_idx
    m = attention_mask.astype(jnp.int32)
    return (jnp.cumsum(m, axis=1) * m + PAD_ID).astype(jnp.int32)


def essay_scoring_forward(params, input_ids, attention_mask):
    B, S = input_ids.shape
    mask_f = attention_mask.astype(jnp.float32)
    mask_bias = (1.0 - mask_f) * MASK_BIAS                 # (B, S), precomputed once

    # embeddings (gathers are plain-JAX glue)
    h = (params["word_emb"][input_ids]
         + params["pos_emb"][_position_ids(attention_mask)]
         + params["type_emb"][jnp.zeros_like(input_ids)])
    emb = h.reshape(B * S, HIDDEN)

    fp = params["fused"]
    logits_pad = pl.pallas_call(
        functools.partial(_fused_model_kernel, batch=B, seq=S),
        out_shape=jax.ShapeDtypeStruct((B, N_OUT_PAD), jnp.float32),
        scratch_shapes=[pltpu.VMEM((B * S, HIDDEN), jnp.float32)],   # attention ctx slab
    )(emb, mask_bias,
      fp["emb_ln_g"], fp["emb_ln_b"],
      fp["wqkv"], fp["bqkv"], fp["wo"], fp["bo"],
      fp["ln1_g"], fp["ln1_b"], fp["wi"], fp["bi"],
      fp["wo2"], fp["bo2"], fp["ln2_g"], fp["ln2_b"],
      fp["out_w"], fp["out_b"])
    return logits_pad[:, :N_OUTPUTS]


# ---------------- pure-JAX reference (for a tolerance self-check) ----------------

def reference_forward(params, input_ids, attention_mask):
    B, S = input_ids.shape
    mask_f = attention_mask.astype(jnp.float32)

    def ln(x, g, b):
        mu = x.mean(-1, keepdims=True)
        xc = x - mu
        return xc * lax.rsqrt((xc * xc).mean(-1, keepdims=True) + LN_EPS) * g + b

    def dense(x, wb):
        return x @ wb[0] + wb[1]

    h = (params["word_emb"][input_ids]
         + params["pos_emb"][_position_ids(attention_mask)]
         + params["type_emb"][jnp.zeros_like(input_ids)])
    h = ln(h, params["emb_ln_g"], params["emb_ln_b"])
    bias = (1.0 - mask_f)[:, None, None, :] * MASK_BIAS
    scale = 1.0 / math.sqrt(HEAD_DIM)
    for lp in params["layers"]:
        q = dense(h, lp["wq"]).reshape(B, S, HEADS, HEAD_DIM).transpose(0, 2, 1, 3)
        k = dense(h, lp["wk"]).reshape(B, S, HEADS, HEAD_DIM).transpose(0, 2, 1, 3)
        v = dense(h, lp["wv"]).reshape(B, S, HEADS, HEAD_DIM).transpose(0, 2, 1, 3)
        s = jnp.einsum("bhqd,bhkd->bhqk", q, k) * scale + bias
        p = jax.nn.softmax(s, axis=-1)
        ctx = jnp.einsum("bhqk,bhkd->bhqd", p, v).transpose(0, 2, 1, 3).reshape(B, S, HIDDEN)
        h = ln(h + dense(ctx, lp["wo"]), *lp["ln1"])
        f = jax.nn.gelu(dense(h, lp["wi"]), approximate=True)
        h = ln(h + dense(f, lp["wo2"]), *lp["ln2"])
    cls = h[:, 0, :]
    return cls @ params["out"][0] + params["out"][1]


if __name__ == "__main__":
    root = jax.random.PRNGKey(0)
    k_params, k_ids = jax.random.split(root)

    B, S = 2, 8
    params = init_params(k_params)
    params["fused"] = fuse_params(params)

    input_ids = jax.random.randint(k_ids, (B, S), 3, VOCAB, dtype=jnp.int32)
    attention_mask = jnp.array(
        [[1, 1, 1, 1, 1, 1, 1, 1],
         [1, 1, 1, 1, 1, 1, 0, 0]], dtype=jnp.int32)

    fwd = jax.jit(essay_scoring_forward)
    logits = fwd(params, input_ids, attention_mask)
    jax.block_until_ready(logits)

    assert logits.shape == (B, N_OUTPUTS) and logits.dtype == jnp.float32
    ref = reference_forward(params, input_ids, attention_mask)
    assert jnp.allclose(logits, ref, atol=1e-2, rtol=1e-2), (logits, ref)
    print("KERNEL_OK")
</pallas_src>

<mosaic_0001>
module attributes {stable_mosaic.version = 11 : i64} {
  func.func @_fused_model_kernel(%arg0: memref<16x32xf32, #tpu.memory_space<vmem>>, %arg1: memref<2x8xf32, #tpu.memory_space<vmem>>, %arg2: memref<1x32xf32, #tpu.memory_space<vmem>>, %arg3: memref<1x32xf32, #tpu.memory_space<vmem>>, %arg4: memref<2x32x96xf32, #tpu.memory_space<vmem>>, %arg5: memref<2x1x96xf32, #tpu.memory_space<vmem>>, %arg6: memref<2x32x32xf32, #tpu.memory_space<vmem>>, %arg7: memref<2x1x32xf32, #tpu.memory_space<vmem>>, %arg8: memref<2x1x32xf32, #tpu.memory_space<vmem>>, %arg9: memref<2x1x32xf32, #tpu.memory_space<vmem>>, %arg10: memref<2x32x64xf32, #tpu.memory_space<vmem>>, %arg11: memref<2x1x64xf32, #tpu.memory_space<vmem>>, %arg12: memref<2x64x32xf32, #tpu.memory_space<vmem>>, %arg13: memref<2x1x32xf32, #tpu.memory_space<vmem>>, %arg14: memref<2x1x32xf32, #tpu.memory_space<vmem>>, %arg15: memref<2x1x32xf32, #tpu.memory_space<vmem>>, %arg16: memref<32x128xf32, #tpu.memory_space<vmem>>, %arg17: memref<1x128xf32, #tpu.memory_space<vmem>>, %arg18: memref<2x128xf32, #tpu.memory_space<vmem>>, %arg19: memref<16x32xf32, #tpu.memory_space<vmem>>) attributes {dimension_semantics = [], scalar_prefetch = 0 : i64, scratch_operands = 1 : i64, tpu.core_type = #tpu.core_type<tc>} {
    %c0 = arith.constant 0 : index
    %c0_0 = arith.constant 0 : index
    %0 = vector.load %arg1[%c0, %c0_0] : memref<2x8xf32, #tpu.memory_space<vmem>>, vector<2x8xf32>
    %c0_1 = arith.constant 0 : index
    %c0_2 = arith.constant 0 : index
    %1 = vector.load %arg0[%c0_1, %c0_2] : memref<16x32xf32, #tpu.memory_space<vmem>>, vector<16x32xf32>
    %c0_3 = arith.constant 0 : index
    %c0_4 = arith.constant 0 : index
    %2 = vector.load %arg2[%c0_3, %c0_4] : memref<1x32xf32, #tpu.memory_space<vmem>>, vector<1x32xf32>
    %c0_5 = arith.constant 0 : index
    %c0_6 = arith.constant 0 : index
    %3 = vector.load %arg3[%c0_5, %c0_6] : memref<1x32xf32, #tpu.memory_space<vmem>>, vector<1x32xf32>
    %cst = arith.constant dense<0.000000e+00> : vector<16xf32>
    %4 = vector.multi_reduction <add>, %1, %cst [1] : vector<16x32xf32> to vector<16xf32>
    %5 = vector.shape_cast %4 : vector<16xf32> to vector<16x1xf32>
    %cst_7 = arith.constant 3.200000e+01 : f32
    %6 = vector.broadcast %cst_7 : f32 to vector<16x1xf32>
    %7 = arith.divf %5, %6 : vector<16x1xf32>
    %8 = vector.broadcast %7 : vector<16x1xf32> to vector<16x32xf32>
    %9 = arith.subf %1, %8 : vector<16x32xf32>
    %10 = arith.mulf %9, %9 : vector<16x32xf32>
    %cst_8 = arith.constant dense<0.000000e+00> : vector<16xf32>
    %11 = vector.multi_reduction <add>, %10, %cst_8 [1] : vector<16x32xf32> to vector<16xf32>
    %12 = vector.shape_cast %11 : vector<16xf32> to vector<16x1xf32>
    %cst_9 = arith.constant 3.200000e+01 : f32
    %13 = vector.broadcast %cst_9 : f32 to vector<16x1xf32>
    %14 = arith.divf %12, %13 : vector<16x1xf32>
    %cst_10 = arith.constant 9.99999974E-6 : f32
    %15 = vector.broadcast %cst_10 : f32 to vector<16x1xf32>
    %16 = arith.addf %14, %15 : vector<16x1xf32>
    %17 = math.rsqrt %16 : vector<16x1xf32>
    %18 = vector.broadcast %17 : vector<16x1xf32> to vector<16x32xf32>
    %19 = arith.mulf %9, %18 : vector<16x32xf32>
    %20 = vector.broadcast %2 : vector<1x32xf32> to vector<16x32xf32>
    %21 = arith.mulf %19, %20 : vector<16x32xf32>
    %22 = vector.broadcast %3 : vector<1x32xf32> to vector<16x32xf32>
    %23 = arith.addf %21, %22 : vector<16x32xf32>
    %c0_11 = arith.constant 0 : index
    %c0_12 = arith.constant 0 : index
    %c0_13 = arith.constant 0 : index
    %24 = vector.load %arg4[%c0_11, %c0_12, %c0_13] : memref<2x32x96xf32, #tpu.memory_space<vmem>>, vector<1x32x96xf32>
    %25 = vector.shape_cast %24 : vector<1x32x96xf32> to vector<32x96xf32>
    %cst_14 = arith.constant dense<0.000000e+00> : vector<16x96xf32>
    %26 = tpu.matmul %23, %25, %cst_14 {dimension_numbers = #tpu.dot_dimension_numbers<[1], [0], [0], [1], [0, 0, 1, 1], [], []>} : vector<16x32xf32>, vector<32x96xf32>, vector<16x96xf32> -> vector<16x96xf32>
    %c0_15 = arith.constant 0 : index
    %c0_16 = arith.constant 0 : index
    %c0_17 = arith.constant 0 : index
    %27 = vector.load %arg5[%c0_15, %c0_16, %c0_17] : memref<2x1x96xf32, #tpu.memory_space<vmem>>, vector<1x1x96xf32>
    %28 = vector.shape_cast %27 : vector<1x1x96xf32> to vector<1x96xf32>
    %29 = vector.broadcast %28 : vector<1x96xf32> to vector<16x96xf32>
    %30 = arith.addf %26, %29 : vector<16x96xf32>
    %31 = vector.extract_strided_slice %30 {offsets = [0, 0], sizes = [16, 32], strides = [1, 1]} : vector<16x96xf32> to vector<16x32xf32>
    %32 = vector.extract_strided_slice %30 {offsets = [0, 32], sizes = [16, 32], strides = [1, 1]} : vector<16x96xf32> to vector<16x32xf32>
    %33 = vector.extract_strided_slice %30 {offsets = [0, 64], sizes = [16, 32], strides = [1, 1]} : vector<16x96xf32> to vector<16x32xf32>
    %34 = vector.extract_strided_slice %0 {offsets = [0, 0], sizes = [1, 8], strides = [1, 1]} : vector<2x8xf32> to vector<1x8xf32>
    %35 = vector.extract_strided_slice %31 {offsets = [0, 0], sizes = [8, 16], strides = [1, 1]} : vector<16x32xf32> to vector<8x16xf32>
    %36 = vector.extract_strided_slice %32 {offsets = [0, 0], sizes = [8, 16], strides = [1, 1]} : vector<16x32xf32> to vector<8x16xf32>
    %37 = vector.extract_strided_slice %33 {offsets = [0, 0], sizes = [8, 16], strides = [1, 1]} : vector<16x32xf32> to vector<8x16xf32>
    %cst_18 = arith.constant dense<0.000000e+00> : vector<8x8xf32>
    %38 = tpu.matmul %35, %36, %cst_18 {dimension_numbers = #tpu.dot_dimension_numbers<[1], [1], [0], [0], [0, 0, 1, 0], [], []>} : vector<8x16xf32>, vector<8x16xf32>, vector<8x8xf32> -> vector<8x8xf32>
    %39 = vector.broadcast %34 : vector<1x8xf32> to vector<8x8xf32>
    %40 = arith.addf %38, %39 : vector<8x8xf32>
    %cst_19 = arith.constant dense<0xFF800000> : vector<8xf32>
    %41 = vector.multi_reduction <maximumf>, %40, %cst_19 [1] : vector<8x8xf32> to vector<8xf32>
    %42 = vector.shape_cast %41 : vector<8xf32> to vector<8x1xf32>
    %43 = vector.broadcast %42 : vector<8x1xf32> to vector<8x8xf32>
    %44 = arith.subf %40, %43 : vector<8x8xf32>
    %45 = math.exp %44 : vector<8x8xf32>
    %cst_20 = arith.constant dense<0.000000e+00> : vector<8xf32>
    %46 = vector.multi_reduction <add>, %45, %cst_20 [1] : vector<8x8xf32> to vector<8xf32>
    %47 = vector.shape_cast %46 : vector<8xf32> to vector<8x1xf32>
    %48 = tpu.reciprocal %47 {approx = true} : vector<8x1xf32> -> vector<8x1xf32>
    %49 = vector.broadcast %48 : vector<8x1xf32> to vector<8x8xf32>
    %50 = arith.mulf %45, %49 : vector<8x8xf32>
    %cst_21 = arith.constant dense<0.000000e+00> : vector<8x16xf32>
    %51 = tpu.matmul %50, %37, %cst_21 {dimension_numbers = #tpu.dot_dimension_numbers<[1], [0], [0], [1], [0, 0, 1, 1], [], []>} : vector<8x8xf32>, vector<8x16xf32>, vector<8x16xf32> -> vector<8x16xf32>
    %c0_22 = arith.constant 0 : index
    %c0_23 = arith.constant 0 : index
    %52 = vector.load %arg19[%c0_22, %c0_23] : memref<16x32xf32, #tpu.memory_space<vmem>>, vector<8x16xf32>
    tpu.vector_store %arg19[%c0_22, %c0_23], %51 {strides = array<i32>} : memref<16x32xf32, #tpu.memory_space<vmem>>, vector<8x16xf32>,
    %53 = vector.extract_strided_slice %31 {offsets = [0, 16], sizes = [8, 16], strides = [1, 1]} : vector<16x32xf32> to vector<8x16xf32>
    %54 = vector.extract_strided_slice %32 {offsets = [0, 16], sizes = [8, 16], strides = [1, 1]} : vector<16x32xf32> to vector<8x16xf32>
    %55 = vector.extract_strided_slice %33 {offsets = [0, 16], sizes = [8, 16], strides = [1, 1]} : vector<16x32xf32> to vector<8x16xf32>
    %cst_24 = arith.constant dense<0.000000e+00> : vector<8x8xf32>
    %56 = tpu.matmul %53, %54, %cst_24 {dimension_numbers = #tpu.dot_dimension_numbers<[1], [1], [0], [0], [0, 0, 1, 0], [], []>} : vector<8x16xf32>, vector<8x16xf32>, vector<8x8xf32> -> vector<8x8xf32>
    %57 = vector.broadcast %34 : vector<1x8xf32> to vector<8x8xf32>
    %58 = arith.addf %56, %57 : vector<8x8xf32>
    %cst_25 = arith.constant dense<0xFF800000> : vector<8xf32>
    %59 = vector.multi_reduction <maximumf>, %58, %cst_25 [1] : vector<8x8xf32> to vector<8xf32>
    %60 = vector.shape_cast %59 : vector<8xf32> to vector<8x1xf32>
    %61 = vector.broadcast %60 : vector<8x1xf32> to vector<8x8xf32>
    %62 = arith.subf %58, %61 : vector<8x8xf32>
    %63 = math.exp %62 : vector<8x8xf32>
    %cst_26 = arith.constant dense<0.000000e+00> : vector<8xf32>
    %64 = vector.multi_reduction <add>, %63, %cst_26 [1] : vector<8x8xf32> to vector<8xf32>
    %65 = vector.shape_cast %64 : vector<8xf32> to vector<8x1xf32>
    %66 = tpu.reciprocal %65 {approx = true} : vector<8x1xf32> -> vector<8x1xf32>
    %67 = vector.broadcast %66 : vector<8x1xf32> to vector<8x8xf32>
    %68 = arith.mulf %63, %67 : vector<8x8xf32>
    %cst_27 = arith.constant dense<0.000000e+00> : vector<8x16xf32>
    %69 = tpu.matmul %68, %55, %cst_27 {dimension_numbers = #tpu.dot_dimension_numbers<[1], [0], [0], [1], [0, 0, 1, 1], [], []>} : vector<8x8xf32>, vector<8x16xf32>, vector<8x16xf32> -> vector<8x16xf32>
    %c0_28 = arith.constant 0 : index
    %c16 = arith.constant 16 : index
    %70 = vector.load %arg19[%c0_28, %c16] : memref<16x32xf32, #tpu.memory_space<vmem>>, vector<8x16xf32>
    tpu.vector_store %arg19[%c0_28, %c16], %69 {strides = array<i32>} : memref<16x32xf32, #tpu.memory_space<vmem>>, vector<8x16xf32>,
    %71 = vector.extract_strided_slice %0 {offsets = [1, 0], sizes = [1, 8], strides = [1, 1]} : vector<2x8xf32> to vector<1x8xf32>
    %72 = vector.extract_strided_slice %31 {offsets = [8, 0], sizes = [8, 16], strides = [1, 1]} : vector<16x32xf32> to vector<8x16xf32>
    %73 = vector.extract_strided_slice %32 {offsets = [8, 0], sizes = [8, 16], strides = [1, 1]} : vector<16x32xf32> to vector<8x16xf32>
    %74 = vector.extract_strided_slice %33 {offsets = [8, 0], sizes = [8, 16], strides = [1, 1]} : vector<16x32xf32> to vector<8x16xf32>
    %cst_29 = arith.constant dense<0.000000e+00> : vector<8x8xf32>
    %75 = tpu.matmul %72, %73, %cst_29 {dimension_numbers = #tpu.dot_dimension_numbers<[1], [1], [0], [0], [0, 0, 1, 0], [], []>} : vector<8x16xf32>, vector<8x16xf32>, vector<8x8xf32> -> vector<8x8xf32>
    %76 = vector.broadcast %71 : vector<1x8xf32> to vector<8x8xf32>
    %77 = arith.addf %75, %76 : vector<8x8xf32>
    %cst_30 = arith.constant dense<0xFF800000> : vector<8xf32>
    %78 = vector.multi_reduction <maximumf>, %77, %cst_30 [1] : vector<8x8xf32> to vector<8xf32>
    %79 = vector.shape_cast %78 : vector<8xf32> to vector<8x1xf32>
    %80 = vector.broadcast %79 : vector<8x1xf32> to vector<8x8xf32>
    %81 = arith.subf %77, %80 : vector<8x8xf32>
    %82 = math.exp %81 : vector<8x8xf32>
    %cst_31 = arith.constant dense<0.000000e+00> : vector<8xf32>
    %83 = vector.multi_reduction <add>, %82, %cst_31 [1] : vector<8x8xf32> to vector<8xf32>
    %84 = vector.shape_cast %83 : vector<8xf32> to vector<8x1xf32>
    %85 = tpu.reciprocal %84 {approx = true} : vector<8x1xf32> -> vector<8x1xf32>
    %86 = vector.broadcast %85 : vector<8x1xf32> to vector<8x8xf32>
    %87 = arith.mulf %82, %86 : vector<8x8xf32>
    %cst_32 = arith.constant dense<0.000000e+00> : vector<8x16xf32>
    %88 = tpu.matmul %87, %74, %cst_32 {dimension_numbers = #tpu.dot_dimension_numbers<[1], [0], [0], [1], [0, 0, 1, 1], [], []>} : vector<8x8xf32>, vector<8x16xf32>, vector<8x16xf32> -> vector<8x16xf32>
    %c8 = arith.constant 8 : index
    %c0_33 = arith.constant 0 : index
    %89 = vector.load %arg19[%c8, %c0_33] : memref<16x32xf32, #tpu.memory_space<vmem>>, vector<8x16xf32>
    tpu.vector_store %arg19[%c8, %c0_33], %88 {strides = array<i32>} : memref<16x32xf32, #tpu.memory_space<vmem>>, vector<8x16xf32>,
    %90 = vector.extract_strided_slice %31 {offsets = [8, 16], sizes = [8, 16], strides = [1, 1]} : vector<16x32xf32> to vector<8x16xf32>
    %91 = vector.extract_strided_slice %32 {offsets = [8, 16], sizes = [8, 16], strides = [1, 1]} : vector<16x32xf32> to vector<8x16xf32>
    %92 = vector.extract_strided_slice %33 {offsets = [8, 16], sizes = [8, 16], strides = [1, 1]} : vector<16x32xf32> to vector<8x16xf32>
    %cst_34 = arith.constant dense<0.000000e+00> : vector<8x8xf32>
    %93 = tpu.matmul %90, %91, %cst_34 {dimension_numbers = #tpu.dot_dimension_numbers<[1], [1], [0], [0], [0, 0, 1, 0], [], []>} : vector<8x16xf32>, vector<8x16xf32>, vector<8x8xf32> -> vector<8x8xf32>
    %94 = vector.broadcast %71 : vector<1x8xf32> to vector<8x8xf32>
    %95 = arith.addf %93, %94 : vector<8x8xf32>
    %cst_35 = arith.constant dense<0xFF800000> : vector<8xf32>
    %96 = vector.multi_reduction <maximumf>, %95, %cst_35 [1] : vector<8x8xf32> to vector<8xf32>
    %97 = vector.shape_cast %96 : vector<8xf32> to vector<8x1xf32>
    %98 = vector.broadcast %97 : vector<8x1xf32> to vector<8x8xf32>
    %99 = arith.subf %95, %98 : vector<8x8xf32>
    %100 = math.exp %99 : vector<8x8xf32>
    %cst_36 = arith.constant dense<0.000000e+00> : vector<8xf32>
    %101 = vector.multi_reduction <add>, %100, %cst_36 [1] : vector<8x8xf32> to vector<8xf32>
    %102 = vector.shape_cast %101 : vector<8xf32> to vector<8x1xf32>
    %103 = tpu.reciprocal %102 {approx = true} : vector<8x1xf32> -> vector<8x1xf32>
    %104 = vector.broadcast %103 : vector<8x1xf32> to vector<8x8xf32>
    %105 = arith.mulf %100, %104 : vector<8x8xf32>
    %cst_37 = arith.constant dense<0.000000e+00> : vector<8x16xf32>
    %106 = tpu.matmul %105, %92, %cst_37 {dimension_numbers = #tpu.dot_dimension_numbers<[1], [0], [0], [1], [0, 0, 1, 1], [], []>} : vector<8x8xf32>, vector<8x16xf32>, vector<8x16xf32> -> vector<8x16xf32>
    %c8_38 = arith.constant 8 : index
    %c16_39 = arith.constant 16 : index
    %107 = vector.load %arg19[%c8_38, %c16_39] : memref<16x32xf32, #tpu.memory_space<vmem>>, vector<8x16xf32>
    tpu.vector_store %arg19[%c8_38, %c16_39], %106 {strides = array<i32>} : memref<16x32xf32, #tpu.memory_space<vmem>>, vector<8x16xf32>,
    %c0_40 = arith.constant 0 : index
    %c0_41 = arith.constant 0 : index
    %108 = vector.load %arg19[%c0_40, %c0_41] : memref<16x32xf32, #tpu.memory_space<vmem>>, vector<16x32xf32>
    %c0_42 = arith.constant 0 : index
    %c0_43 = arith.constant 0 : index
    %c0_44 = arith.constant 0 : index
    %109 = vector.load %arg6[%c0_42, %c0_43, %c0_44] : memref<2x32x32xf32, #tpu.memory_space<vmem>>, vector<1x32x32xf32>
    %110 = vector.shape_cast %109 : vector<1x32x32xf32> to vector<32x32xf32>
    %cst_45 = arith.constant dense<0.000000e+00> : vector<16x32xf32>
    %111 = tpu.matmul %108, %110, %cst_45 {dimension_numbers = #tpu.dot_dimension_numbers<[1], [0], [0], [1], [0, 0, 1, 1], [], []>} : vector<16x32xf32>, vector<32x32xf32>, vector<16x32xf32> -> vector<16x32xf32>
    %c0_46 = arith.constant 0 : index
    %c0_47 = arith.constant 0 : index
    %c0_48 = arith.constant 0 : index
    %112 = vector.load %arg7[%c0_46, %c0_47, %c0_48] : memref<2x1x32xf32, #tpu.memory_space<vmem>>, vector<1x1x32xf32>
    %113 = vector.shape_cast %112 : vector<1x1x32xf32> to vector<1x32xf32>
    %114 = vector.broadcast %113 : vector<1x32xf32> to vector<16x32xf32>
    %115 = arith.addf %111, %114 : vector<16x32xf32>
    %116 = arith.addf %23, %115 : vector<16x32xf32>
    %c0_49 = arith.constant 0 : index
    %c0_50 = arith.constant 0 : index
    %c0_51 = arith.constant 0 : index
    %117 = vector.load %arg8[%c0_49, %c0_50, %c0_51] : memref<2x1x32xf32, #tpu.memory_space<vmem>>, vector<1x1x32xf32>
    %118 = vector.shape_cast %117 : vector<1x1x32xf32> to vector<1x32xf32>
    %c0_52 = arith.constant 0 : index
    %c0_53 = arith.constant 0 : index
    %c0_54 = arith.constant 0 : index
    %119 = vector.load %arg9[%c0_52, %c0_53, %c0_54] : memref<2x1x32xf32, #tpu.memory_space<vmem>>, vector<1x1x32xf32>
    %120 = vector.shape_cast %119 : vector<1x1x32xf32> to vector<1x32xf32>
    %cst_55 = arith.constant dense<0.000000e+00> : vector<16xf32>
    %121 = vector.multi_reduction <add>, %116, %cst_55 [1] : vector<16x32xf32> to vector<16xf32>
    %122 = vector.shape_cast %121 : vector<16xf32> to vector<16x1xf32>
    %cst_56 = arith.constant 3.200000e+01 : f32
    %123 = vector.broadcast %cst_56 : f32 to vector<16x1xf32>
    %124 = arith.divf %122, %123 : vector<16x1xf32>
    %125 = vector.broadcast %124 : vector<16x1xf32> to vector<16x32xf32>
    %126 = arith.subf %116, %125 : vector<16x32xf32>
    %127 = arith.mulf %126, %126 : vector<16x32xf32>
    %cst_57 = arith.constant dense<0.000000e+00> : vector<16xf32>
    %128 = vector.multi_reduction <add>, %127, %cst_57 [1] : vector<16x32xf32> to vector<16xf32>
    %129 = vector.shape_cast %128 : vector<16xf32> to vector<16x1xf32>
    %cst_58 = arith.constant 3.200000e+01 : f32
    %130 = vector.broadcast %cst_58 : f32 to vector<16x1xf32>
    %131 = arith.divf %129, %130 : vector<16x1xf32>
    %cst_59 = arith.constant 9.99999974E-6 : f32
    %132 = vector.broadcast %cst_59 : f32 to vector<16x1xf32>
    %133 = arith.addf %131, %132 : vector<16x1xf32>
    %134 = math.rsqrt %133 : vector<16x1xf32>
    %135 = vector.broadcast %134 : vector<16x1xf32> to vector<16x32xf32>
    %136 = arith.mulf %126, %135 : vector<16x32xf32>
    %137 = vector.broadcast %118 : vector<1x32xf32> to vector<16x32xf32>
    %138 = arith.mulf %136, %137 : vector<16x32xf32>
    %139 = vector.broadcast %120 : vector<1x32xf32> to vector<16x32xf32>
    %140 = arith.addf %138, %139 : vector<16x32xf32>
    %c0_60 = arith.constant 0 : index
    %c0_61 = arith.constant 0 : index
    %c0_62 = arith.constant 0 : index
    %141 = vector.load %arg10[%c0_60, %c0_61, %c0_62] : memref<2x32x64xf32, #tpu.memory_space<vmem>>, vector<1x32x64xf32>
    %142 = vector.shape_cast %141 : vector<1x32x64xf32> to vector<32x64xf32>
    %cst_63 = arith.constant dense<0.000000e+00> : vector<16x64xf32>
    %143 = tpu.matmul %140, %142, %cst_63 {dimension_numbers = #tpu.dot_dimension_numbers<[1], [0], [0], [1], [0, 0, 1, 1], [], []>} : vector<16x32xf32>, vector<32x64xf32>, vector<16x64xf32> -> vector<16x64xf32>
    %c0_64 = arith.constant 0 : index
    %c0_65 = arith.constant 0 : index
    %c0_66 = arith.constant 0 : index
    %144 = vector.load %arg11[%c0_64, %c0_65, %c0_66] : memref<2x1x64xf32, #tpu.memory_space<vmem>>, vector<1x1x64xf32>
    %145 = vector.shape_cast %144 : vector<1x1x64xf32> to vector<1x64xf32>
    %146 = vector.broadcast %145 : vector<1x64xf32> to vector<16x64xf32>
    %147 = arith.addf %143, %146 : vector<16x64xf32>
    %148 = arith.mulf %147, %147 : vector<16x64xf32>
    %149 = arith.mulf %147, %148 : vector<16x64xf32>
    %cst_67 = arith.constant 4.471500e-02 : f32
    %150 = vector.broadcast %cst_67 : f32 to vector<16x64xf32>
    %151 = arith.mulf %150, %149 : vector<16x64xf32>
    %152 = arith.addf %147, %151 : vector<16x64xf32>
    %cst_68 = arith.constant 0.797884583 : f32
    %153 = vector.broadcast %cst_68 : f32 to vector<16x64xf32>
    %154 = arith.mulf %153, %152 : vector<16x64xf32>
    %155 = math.tanh %154 : vector<16x64xf32>
    %cst_69 = arith.constant 1.000000e+00 : f32
    %156 = vector.broadcast %cst_69 : f32 to vector<16x64xf32>
    %157 = arith.addf %156, %155 : vector<16x64xf32>
    %cst_70 = arith.constant 5.000000e-01 : f32
    %158 = vector.broadcast %cst_70 : f32 to vector<16x64xf32>
    %159 = arith.mulf %158, %157 : vector<16x64xf32>
    %160 = arith.mulf %147, %159 : vector<16x64xf32>
    %c0_71 = arith.constant 0 : index
    %c0_72 = arith.constant 0 : index
    %c0_73 = arith.constant 0 : index
    %161 = vector.load %arg12[%c0_71, %c0_72, %c0_73] : memref<2x64x32xf32, #tpu.memory_space<vmem>>, vector<1x64x32xf32>
    %162 = vector.shape_cast %161 : vector<1x64x32xf32> to vector<64x32xf32>
    %cst_74 = arith.constant dense<0.000000e+00> : vector<16x32xf32>
    %163 = tpu.matmul %160, %162, %cst_74 {dimension_numbers = #tpu.dot_dimension_numbers<[1], [0], [0], [1], [0, 0, 1, 1], [], []>} : vector<16x64xf32>, vector<64x32xf32>, vector<16x32xf32> -> vector<16x32xf32>
    %c0_75 = arith.constant 0 : index
    %c0_76 = arith.constant 0 : index
    %c0_77 = arith.constant 0 : index
    %164 = vector.load %arg13[%c0_75, %c0_76, %c0_77] : memref<2x1x32xf32, #tpu.memory_space<vmem>>, vector<1x1x32xf32>
    %165 = vector.shape_cast %164 : vector<1x1x32xf32> to vector<1x32xf32>
    %166 = vector.broadcast %165 : vector<1x32xf32> to vector<16x32xf32>
    %167 = arith.addf %163, %166 : vector<16x32xf32>
    %168 = arith.addf %140, %167 : vector<16x32xf32>
    %c0_78 = arith.constant 0 : index
    %c0_79 = arith.constant 0 : index
    %c0_80 = arith.constant 0 : index
    %169 = vector.load %arg14[%c0_78, %c0_79, %c0_80] : memref<2x1x32xf32, #tpu.memory_space<vmem>>, vector<1x1x32xf32>
    %170 = vector.shape_cast %169 : vector<1x1x32xf32> to vector<1x32xf32>
    %c0_81 = arith.constant 0 : index
    %c0_82 = arith.constant 0 : index
    %c0_83 = arith.constant 0 : index
    %171 = vector.load %arg15[%c0_81, %c0_82, %c0_83] : memref<2x1x32xf32, #tpu.memory_space<vmem>>, vector<1x1x32xf32>
    %172 = vector.shape_cast %171 : vector<1x1x32xf32> to vector<1x32xf32>
    %cst_84 = arith.constant dense<0.000000e+00> : vector<16xf32>
    %173 = vector.multi_reduction <add>, %168, %cst_84 [1] : vector<16x32xf32> to vector<16xf32>
    %174 = vector.shape_cast %173 : vector<16xf32> to vector<16x1xf32>
    %cst_85 = arith.constant 3.200000e+01 : f32
    %175 = vector.broadcast %cst_85 : f32 to vector<16x1xf32>
    %176 = arith.divf %174, %175 : vector<16x1xf32>
    %177 = vector.broadcast %176 : vector<16x1xf32> to vector<16x32xf32>
    %178 = arith.subf %168, %177 : vector<16x32xf32>
    %179 = arith.mulf %178, %178 : vector<16x32xf32>
    %cst_86 = arith.constant dense<0.000000e+00> : vector<16xf32>
    %180 = vector.multi_reduction <add>, %179, %cst_86 [1] : vector<16x32xf32> to vector<16xf32>
    %181 = vector.shape_cast %180 : vector<16xf32> to vector<16x1xf32>
    %cst_87 = arith.constant 3.200000e+01 : f32
    %182 = vector.broadcast %cst_87 : f32 to vector<16x1xf32>
    %183 = arith.divf %181, %182 : vector<16x1xf32>
    %cst_88 = arith.constant 9.99999974E-6 : f32
    %184 = vector.broadcast %cst_88 : f32 to vector<16x1xf32>
    %185 = arith.addf %183, %184 : vector<16x1xf32>
    %186 = math.rsqrt %185 : vector<16x1xf32>
    %187 = vector.broadcast %186 : vector<16x1xf32> to vector<16x32xf32>
    %188 = arith.mulf %178, %187 : vector<16x32xf32>
    %189 = vector.broadcast %170 : vector<1x32xf32> to vector<16x32xf32>
    %190 = arith.mulf %188, %189 : vector<16x32xf32>
    %191 = vector.broadcast %172 : vector<1x32xf32> to vector<16x32xf32>
    %192 = arith.addf %190, %191 : vector<16x32xf32>
    %c1 = arith.constant 1 : index
    %c0_89 = arith.constant 0 : index
    %c0_90 = arith.constant 0 : index
    %193 = vector.load %arg4[%c1, %c0_89, %c0_90] : memref<2x32x96xf32, #tpu.memory_space<vmem>>, vector<1x32x96xf32>
    %194 = vector.shape_cast %193 : vector<1x32x96xf32> to vector<32x96xf32>
    %cst_91 = arith.constant dense<0.000000e+00> : vector<16x96xf32>
    %195 = tpu.matmul %192, %194, %cst_91 {dimension_numbers = #tpu.dot_dimension_numbers<[1], [0], [0], [1], [0, 0, 1, 1], [], []>} : vector<16x32xf32>, vector<32x96xf32>, vector<16x96xf32> -> vector<16x96xf32>
    %c1_92 = arith.constant 1 : index
    %c0_93 = arith.constant 0 : index
    %c0_94 = arith.constant 0 : index
    %196 = vector.load %arg5[%c1_92, %c0_93, %c0_94] : memref<2x1x96xf32, #tpu.memory_space<vmem>>, vector<1x1x96xf32>
    %197 = vector.shape_cast %196 : vector<1x1x96xf32> to vector<1x96xf32>
    %198 = vector.broadcast %197 : vector<1x96xf32> to vector<16x96xf32>
    %199 = arith.addf %195, %198 : vector<16x96xf32>
    %200 = vector.extract_strided_slice %199 {offsets = [0, 0], sizes = [16, 32], strides = [1, 1]} : vector<16x96xf32> to vector<16x32xf32>
    %201 = vector.extract_strided_slice %199 {offsets = [0, 32], sizes = [16, 32], strides = [1, 1]} : vector<16x96xf32> to vector<16x32xf32>
    %202 = vector.extract_strided_slice %199 {offsets = [0, 64], sizes = [16, 32], strides = [1, 1]} : vector<16x96xf32> to vector<16x32xf32>
    %203 = vector.extract_strided_slice %0 {offsets = [0, 0], sizes = [1, 8], strides = [1, 1]} : vector<2x8xf32> to vector<1x8xf32>
    %204 = vector.extract_strided_slice %200 {offsets = [0, 0], sizes = [8, 16], strides = [1, 1]} : vector<16x32xf32> to vector<8x16xf32>
    %205 = vector.extract_strided_slice %201 {offsets = [0, 0], sizes = [8, 16], strides = [1, 1]} : vector<16x32xf32> to vector<8x16xf32>
    %206 = vector.extract_strided_slice %202 {offsets = [0, 0], sizes = [8, 16], strides = [1, 1]} : vector<16x32xf32> to vector<8x16xf32>
    %cst_95 = arith.constant dense<0.000000e+00> : vector<8x8xf32>
    %207 = tpu.matmul %204, %205, %cst_95 {dimension_numbers = #tpu.dot_dimension_numbers<[1], [1], [0], [0], [0, 0, 1, 0], [], []>} : vector<8x16xf32>, vector<8x16xf32>, vector<8x8xf32> -> vector<8x8xf32>
    %208 = vector.broadcast %203 : vector<1x8xf32> to vector<8x8xf32>
    %209 = arith.addf %207, %208 : vector<8x8xf32>
    %cst_96 = arith.constant dense<0xFF800000> : vector<8xf32>
    %210 = vector.multi_reduction <maximumf>, %209, %cst_96 [1] : vector<8x8xf32> to vector<8xf32>
    %211 = vector.shape_cast %210 : vector<8xf32> to vector<8x1xf32>
    %212 = vector.broadcast %211 : vector<8x1xf32> to vector<8x8xf32>
    %213 = arith.subf %209, %212 : vector<8x8xf32>
    %214 = math.exp %213 : vector<8x8xf32>
    %cst_97 = arith.constant dense<0.000000e+00> : vector<8xf32>
    %215 = vector.multi_reduction <add>, %214, %cst_97 [1] : vector<8x8xf32> to vector<8xf32>
    %216 = vector.shape_cast %215 : vector<8xf32> to vector<8x1xf32>
    %217 = tpu.reciprocal %216 {approx = true} : vector<8x1xf32> -> vector<8x1xf32>
    %218 = vector.broadcast %217 : vector<8x1xf32> to vector<8x8xf32>
    %219 = arith.mulf %214, %218 : vector<8x8xf32>
    %cst_98 = arith.constant dense<0.000000e+00> : vector<8x16xf32>
    %220 = tpu.matmul %219, %206, %cst_98 {dimension_numbers = #tpu.dot_dimension_numbers<[1], [0], [0], [1], [0, 0, 1, 1], [], []>} : vector<8x8xf32>, vector<8x16xf32>, vector<8x16xf32> -> vector<8x16xf32>
    %c0_99 = arith.constant 0 : index
    %c0_100 = arith.constant 0 : index
    %221 = vector.load %arg19[%c0_99, %c0_100] : memref<16x32xf32, #tpu.memory_space<vmem>>, vector<8x16xf32>
    tpu.vector_store %arg19[%c0_99, %c0_100], %220 {strides = array<i32>} : memref<16x32xf32, #tpu.memory_space<vmem>>, vector<8x16xf32>,
    %222 = vector.extract_strided_slice %200 {offsets = [0, 16], sizes = [8, 16], strides = [1, 1]} : vector<16x32xf32> to vector<8x16xf32>
    %223 = vector.extract_strided_slice %201 {offsets = [0, 16], sizes = [8, 16], strides = [1, 1]} : vector<16x32xf32> to vector<8x16xf32>
    %224 = vector.extract_strided_slice %202 {offsets = [0, 16], sizes = [8, 16], strides = [1, 1]} : vector<16x32xf32> to vector<8x16xf32>
    %cst_101 = arith.constant dense<0.000000e+00> : vector<8x8xf32>
    %225 = tpu.matmul %222, %223, %cst_101 {dimension_numbers = #tpu.dot_dimension_numbers<[1], [1], [0], [0], [0, 0, 1, 0], [], []>} : vector<8x16xf32>, vector<8x16xf32>, vector<8x8xf32> -> vector<8x8xf32>
    %226 = vector.broadcast %203 : vector<1x8xf32> to vector<8x8xf32>
    %227 = arith.addf %225, %226 : vector<8x8xf32>
    %cst_102 = arith.constant dense<0xFF800000> : vector<8xf32>
    %228 = vector.multi_reduction <maximumf>, %227, %cst_102 [1] : vector<8x8xf32> to vector<8xf32>
    %229 = vector.shape_cast %228 : vector<8xf32> to vector<8x1xf32>
    %230 = vector.broadcast %229 : vector<8x1xf32> to vector<8x8xf32>
    %231 = arith.subf %227, %230 : vector<8x8xf32>
    %232 = math.exp %231 : vector<8x8xf32>
    %cst_103 = arith.constant dense<0.000000e+00> : vector<8xf32>
    %233 = vector.multi_reduction <add>, %232, %cst_103 [1] : vector<8x8xf32> to vector<8xf32>
    %234 = vector.shape_cast %233 : vector<8xf32> to vector<8x1xf32>
    %235 = tpu.reciprocal %234 {approx = true} : vector<8x1xf32> -> vector<8x1xf32>
    %236 = vector.broadcast %235 : vector<8x1xf32> to vector<8x8xf32>
    %237 = arith.mulf %232, %236 : vector<8x8xf32>
    %cst_104 = arith.constant dense<0.000000e+00> : vector<8x16xf32>
    %238 = tpu.matmul %237, %224, %cst_104 {dimension_numbers = #tpu.dot_dimension_numbers<[1], [0], [0], [1], [0, 0, 1, 1], [], []>} : vector<8x8xf32>, vector<8x16xf32>, vector<8x16xf32> -> vector<8x16xf32>
    %c0_105 = arith.constant 0 : index
    %c16_106 = arith.constant 16 : index
    %239 = vector.load %arg19[%c0_105, %c16_106] : memref<16x32xf32, #tpu.memory_space<vmem>>, vector<8x16xf32>
    tpu.vector_store %arg19[%c0_105, %c16_106], %238 {strides = array<i32>} : memref<16x32xf32, #tpu.memory_space<vmem>>, vector<8x16xf32>,
    %240 = vector.extract_strided_slice %0 {offsets = [1, 0], sizes = [1, 8], strides = [1, 1]} : vector<2x8xf32> to vector<1x8xf32>
    %241 = vector.extract_strided_slice %200 {offsets = [8, 0], sizes = [8, 16], strides = [1, 1]} : vector<16x32xf32> to vector<8x16xf32>
    %242 = vector.extract_strided_slice %201 {offsets = [8, 0], sizes = [8, 16], strides = [1, 1]} : vector<16x32xf32> to vector<8x16xf32>
    %243 = vector.extract_strided_slice %202 {offsets = [8, 0], sizes = [8, 16], strides = [1, 1]} : vector<16x32xf32> to vector<8x16xf32>
    %cst_107 = arith.constant dense<0.000000e+00> : vector<8x8xf32>
    %244 = tpu.matmul %241, %242, %cst_107 {dimension_numbers = #tpu.dot_dimension_numbers<[1], [1], [0], [0], [0, 0, 1, 0], [], []>} : vector<8x16xf32>, vector<8x16xf32>, vector<8x8xf32> -> vector<8x8xf32>
    %245 = vector.broadcast %240 : vector<1x8xf32> to vector<8x8xf32>
    %246 = arith.addf %244, %245 : vector<8x8xf32>
    %cst_108 = arith.constant dense<0xFF800000> : vector<8xf32>
    %247 = vector.multi_reduction <maximumf>, %246, %cst_108 [1] : vector<8x8xf32> to vector<8xf32>
    %248 = vector.shape_cast %247 : vector<8xf32> to vector<8x1xf32>
    %249 = vector.broadcast %248 : vector<8x1xf32> to vector<8x8xf32>
    %250 = arith.subf %246, %249 : vector<8x8xf32>
    %251 = math.exp %250 : vector<8x8xf32>
    %cst_109 = arith.constant dense<0.000000e+00> : vector<8xf32>
    %252 = vector.multi_reduction <add>, %251, %cst_109 [1] : vector<8x8xf32> to vector<8xf32>
    %253 = vector.shape_cast %252 : vector<8xf32> to vector<8x1xf32>
    %254 = tpu.reciprocal %253 {approx = true} : vector<8x1xf32> -> vector<8x1xf32>
    %255 = vector.broadcast %254 : vector<8x1xf32> to vector<8x8xf32>
    %256 = arith.mulf %251, %255 : vector<8x8xf32>
    %cst_110 = arith.constant dense<0.000000e+00> : vector<8x16xf32>
    %257 = tpu.matmul %256, %243, %cst_110 {dimension_numbers = #tpu.dot_dimension_numbers<[1], [0], [0], [1], [0, 0, 1, 1], [], []>} : vector<8x8xf32>, vector<8x16xf32>, vector<8x16xf32> -> vector<8x16xf32>
    %c8_111 = arith.constant 8 : index
    %c0_112 = arith.constant 0 : index
    %258 = vector.load %arg19[%c8_111, %c0_112] : memref<16x32xf32, #tpu.memory_space<vmem>>, vector<8x16xf32>
    tpu.vector_store %arg19[%c8_111, %c0_112], %257 {strides = array<i32>} : memref<16x32xf32, #tpu.memory_space<vmem>>, vector<8x16xf32>,
    %259 = vector.extract_strided_slice %200 {offsets = [8, 16], sizes = [8, 16], strides = [1, 1]} : vector<16x32xf32> to vector<8x16xf32>
    %260 = vector.extract_strided_slice %201 {offsets = [8, 16], sizes = [8, 16], strides = [1, 1]} : vector<16x32xf32> to vector<8x16xf32>
    %261 = vector.extract_strided_slice %202 {offsets = [8, 16], sizes = [8, 16], strides = [1, 1]} : vector<16x32xf32> to vector<8x16xf32>
    %cst_113 = arith.constant dense<0.000000e+00> : vector<8x8xf32>
    %262 = tpu.matmul %259, %260, %cst_113 {dimension_numbers = #tpu.dot_dimension_numbers<[1], [1], [0], [0], [0, 0, 1, 0], [], []>} : vector<8x16xf32>, vector<8x16xf32>, vector<8x8xf32> -> vector<8x8xf32>
    %263 = vector.broadcast %240 : vector<1x8xf32> to vector<8x8xf32>
    %264 = arith.addf %262, %263 : vector<8x8xf32>
    %cst_114 = arith.constant dense<0xFF800000> : vector<8xf32>
    %265 = vector.multi_reduction <maximumf>, %264, %cst_114 [1] : vector<8x8xf32> to vector<8xf32>
    %266 = vector.shape_cast %265 : vector<8xf32> to vector<8x1xf32>
    %267 = vector.broadcast %266 : vector<8x1xf32> to vector<8x8xf32>
    %268 = arith.subf %264, %267 : vector<8x8xf32>
    %269 = math.exp %268 : vector<8x8xf32>
    %cst_115 = arith.constant dense<0.000000e+00> : vector<8xf32>
    %270 = vector.multi_reduction <add>, %269, %cst_115 [1] : vector<8x8xf32> to vector<8xf32>
    %271 = vector.shape_cast %270 : vector<8xf32> to vector<8x1xf32>
    %272 = tpu.reciprocal %271 {approx = true} : vector<8x1xf32> -> vector<8x1xf32>
    %273 = vector.broadcast %272 : vector<8x1xf32> to vector<8x8xf32>
    %274 = arith.mulf %269, %273 : vector<8x8xf32>
    %cst_116 = arith.constant dense<0.000000e+00> : vector<8x16xf32>
    %275 = tpu.matmul %274, %261, %cst_116 {dimension_numbers = #tpu.dot_dimension_numbers<[1], [0], [0], [1], [0, 0, 1, 1], [], []>} : vector<8x8xf32>, vector<8x16xf32>, vector<8x16xf32> -> vector<8x16xf32>
    %c8_117 = arith.constant 8 : index
    %c16_118 = arith.constant 16 : index
    %276 = vector.load %arg19[%c8_117, %c16_118] : memref<16x32xf32, #tpu.memory_space<vmem>>, vector<8x16xf32>
    tpu.vector_store %arg19[%c8_117, %c16_118], %275 {strides = array<i32>} : memref<16x32xf32, #tpu.memory_space<vmem>>, vector<8x16xf32>,
    %c0_119 = arith.constant 0 : index
    %c0_120 = arith.constant 0 : index
    %277 = vector.load %arg19[%c0_119, %c0_120] : memref<16x32xf32, #tpu.memory_space<vmem>>, vector<16x32xf32>
    %c1_121 = arith.constant 1 : index
    %c0_122 = arith.constant 0 : index
    %c0_123 = arith.constant 0 : index
    %278 = vector.load %arg6[%c1_121, %c0_122, %c0_123] : memref<2x32x32xf32, #tpu.memory_space<vmem>>, vector<1x32x32xf32>
    %279 = vector.shape_cast %278 : vector<1x32x32xf32> to vector<32x32xf32>
    %cst_124 = arith.constant dense<0.000000e+00> : vector<16x32xf32>
    %280 = tpu.matmul %277, %279, %cst_124 {dimension_numbers = #tpu.dot_dimension_numbers<[1], [0], [0], [1], [0, 0, 1, 1], [], []>} : vector<16x32xf32>, vector<32x32xf32>, vector<16x32xf32> -> vector<16x32xf32>
    %c1_125 = arith.constant 1 : index
    %c0_126 = arith.constant 0 : index
    %c0_127 = arith.constant 0 : index
    %281 = vector.load %arg7[%c1_125, %c0_126, %c0_127] : memref<2x1x32xf32, #tpu.memory_space<vmem>>, vector<1x1x32xf32>
    %282 = vector.shape_cast %281 : vector<1x1x32xf32> to vector<1x32xf32>
    %283 = vector.broadcast %282 : vector<1x32xf32> to vector<16x32xf32>
    %284 = arith.addf %280, %283 : vector<16x32xf32>
    %285 = arith.addf %192, %284 : vector<16x32xf32>
    %c1_128 = arith.constant 1 : index
    %c0_129 = arith.constant 0 : index
    %c0_130 = arith.constant 0 : index
    %286 = vector.load %arg8[%c1_128, %c0_129, %c0_130] : memref<2x1x32xf32, #tpu.memory_space<vmem>>, vector<1x1x32xf32>
    %287 = vector.shape_cast %286 : vector<1x1x32xf32> to vector<1x32xf32>
    %c1_131 = arith.constant 1 : index
    %c0_132 = arith.constant 0 : index
    %c0_133 = arith.constant 0 : index
    %288 = vector.load %arg9[%c1_131, %c0_132, %c0_133] : memref<2x1x32xf32, #tpu.memory_space<vmem>>, vector<1x1x32xf32>
    %289 = vector.shape_cast %288 : vector<1x1x32xf32> to vector<1x32xf32>
    %cst_134 = arith.constant dense<0.000000e+00> : vector<16xf32>
    %290 = vector.multi_reduction <add>, %285, %cst_134 [1] : vector<16x32xf32> to vector<16xf32>
    %291 = vector.shape_cast %290 : vector<16xf32> to vector<16x1xf32>
    %cst_135 = arith.constant 3.200000e+01 : f32
    %292 = vector.broadcast %cst_135 : f32 to vector<16x1xf32>
    %293 = arith.divf %291, %292 : vector<16x1xf32>
    %294 = vector.broadcast %293 : vector<16x1xf32> to vector<16x32xf32>
    %295 = arith.subf %285, %294 : vector<16x32xf32>
    %296 = arith.mulf %295, %295 : vector<16x32xf32>
    %cst_136 = arith.constant dense<0.000000e+00> : vector<16xf32>
    %297 = vector.multi_reduction <add>, %296, %cst_136 [1] : vector<16x32xf32> to vector<16xf32>
    %298 = vector.shape_cast %297 : vector<16xf32> to vector<16x1xf32>
    %cst_137 = arith.constant 3.200000e+01 : f32
    %299 = vector.broadcast %cst_137 : f32 to vector<16x1xf32>
    %300 = arith.divf %298, %299 : vector<16x1xf32>
    %cst_138 = arith.constant 9.99999974E-6 : f32
    %301 = vector.broadcast %cst_138 : f32 to vector<16x1xf32>
    %302 = arith.addf %300, %301 : vector<16x1xf32>
    %303 = math.rsqrt %302 : vector<16x1xf32>
    %304 = vector.broadcast %303 : vector<16x1xf32> to vector<16x32xf32>
    %305 = arith.mulf %295, %304 : vector<16x32xf32>
    %306 = vector.broadcast %287 : vector<1x32xf32> to vector<16x32xf32>
    %307 = arith.mulf %305, %306 : vector<16x32xf32>
    %308 = vector.broadcast %289 : vector<1x32xf32> to vector<16x32xf32>
    %309 = arith.addf %307, %308 : vector<16x32xf32>
    %c1_139 = arith.constant 1 : index
    %c0_140 = arith.constant 0 : index
    %c0_141 = arith.constant 0 : index
    %310 = vector.load %arg10[%c1_139, %c0_140, %c0_141] : memref<2x32x64xf32, #tpu.memory_space<vmem>>, vector<1x32x64xf32>
    %311 = vector.shape_cast %310 : vector<1x32x64xf32> to vector<32x64xf32>
    %cst_142 = arith.constant dense<0.000000e+00> : vector<16x64xf32>
    %312 = tpu.matmul %309, %311, %cst_142 {dimension_numbers = #tpu.dot_dimension_numbers<[1], [0], [0], [1], [0, 0, 1, 1], [], []>} : vector<16x32xf32>, vector<32x64xf32>, vector<16x64xf32> -> vector<16x64xf32>
    %c1_143 = arith.constant 1 : index
    %c0_144 = arith.constant 0 : index
    %c0_145 = arith.constant 0 : index
    %313 = vector.load %arg11[%c1_143, %c0_144, %c0_145] : memref<2x1x64xf32, #tpu.memory_space<vmem>>, vector<1x1x64xf32>
    %314 = vector.shape_cast %313 : vector<1x1x64xf32> to vector<1x64xf32>
    %315 = vector.broadcast %314 : vector<1x64xf32> to vector<16x64xf32>
    %316 = arith.addf %312, %315 : vector<16x64xf32>
    %317 = arith.mulf %316, %316 : vector<16x64xf32>
    %318 = arith.mulf %316, %317 : vector<16x64xf32>
    %cst_146 = arith.constant 4.471500e-02 : f32
    %319 = vector.broadcast %cst_146 : f32 to vector<16x64xf32>
    %320 = arith.mulf %319, %318 : vector<16x64xf32>
    %321 = arith.addf %316, %320 : vector<16x64xf32>
    %cst_147 = arith.constant 0.797884583 : f32
    %322 = vector.broadcast %cst_147 : f32 to vector<16x64xf32>
    %323 = arith.mulf %322, %321 : vector<16x64xf32>
    %324 = math.tanh %323 : vector<16x64xf32>
    %cst_148 = arith.constant 1.000000e+00 : f32
    %325 = vector.broadcast %cst_148 : f32 to vector<16x64xf32>
    %326 = arith.addf %325, %324 : vector<16x64xf32>
    %cst_149 = arith.constant 5.000000e-01 : f32
    %327 = vector.broadcast %cst_149 : f32 to vector<16x64xf32>
    %328 = arith.mulf %327, %326 : vector<16x64xf32>
    %329 = arith.mulf %316, %328 : vector<16x64xf32>
    %c1_150 = arith.constant 1 : index
    %c0_151 = arith.constant 0 : index
    %c0_152 = arith.constant 0 : index
    %330 = vector.load %arg12[%c1_150, %c0_151, %c0_152] : memref<2x64x32xf32, #tpu.memory_space<vmem>>, vector<1x64x32xf32>
    %331 = vector.shape_cast %330 : vector<1x64x32xf32> to vector<64x32xf32>
    %cst_153 = arith.constant dense<0.000000e+00> : vector<16x32xf32>
    %332 = tpu.matmul %329, %331, %cst_153 {dimension_numbers = #tpu.dot_dimension_numbers<[1], [0], [0], [1], [0, 0, 1, 1], [], []>} : vector<16x64xf32>, vector<64x32xf32>, vector<16x32xf32> -> vector<16x32xf32>
    %c1_154 = arith.constant 1 : index
    %c0_155 = arith.constant 0 : index
    %c0_156 = arith.constant 0 : index
    %333 = vector.load %arg13[%c1_154, %c0_155, %c0_156] : memref<2x1x32xf32, #tpu.memory_space<vmem>>, vector<1x1x32xf32>
    %334 = vector.shape_cast %333 : vector<1x1x32xf32> to vector<1x32xf32>
    %335 = vector.broadcast %334 : vector<1x32xf32> to vector<16x32xf32>
    %336 = arith.addf %332, %335 : vector<16x32xf32>
    %337 = arith.addf %309, %336 : vector<16x32xf32>
    %c1_157 = arith.constant 1 : index
    %c0_158 = arith.constant 0 : index
    %c0_159 = arith.constant 0 : index
    %338 = vector.load %arg14[%c1_157, %c0_158, %c0_159] : memref<2x1x32xf32, #tpu.memory_space<vmem>>, vector<1x1x32xf32>
    %339 = vector.shape_cast %338 : vector<1x1x32xf32> to vector<1x32xf32>
    %c1_160 = arith.constant 1 : index
    %c0_161 = arith.constant 0 : index
    %c0_162 = arith.constant 0 : index
    %340 = vector.load %arg15[%c1_160, %c0_161, %c0_162] : memref<2x1x32xf32, #tpu.memory_space<vmem>>, vector<1x1x32xf32>
    %341 = vector.shape_cast %340 : vector<1x1x32xf32> to vector<1x32xf32>
    %cst_163 = arith.constant dense<0.000000e+00> : vector<16xf32>
    %342 = vector.multi_reduction <add>, %337, %cst_163 [1] : vector<16x32xf32> to vector<16xf32>
    %343 = vector.shape_cast %342 : vector<16xf32> to vector<16x1xf32>
    %cst_164 = arith.constant 3.200000e+01 : f32
    %344 = vector.broadcast %cst_164 : f32 to vector<16x1xf32>
    %345 = arith.divf %343, %344 : vector<16x1xf32>
    %346 = vector.broadcast %345 : vector<16x1xf32> to vector<16x32xf32>
    %347 = arith.subf %337, %346 : vector<16x32xf32>
    %348 = arith.mulf %347, %347 : vector<16x32xf32>
    %cst_165 = arith.constant dense<0.000000e+00> : vector<16xf32>
    %349 = vector.multi_reduction <add>, %348, %cst_165 [1] : vector<16x32xf32> to vector<16xf32>
    %350 = vector.shape_cast %349 : vector<16xf32> to vector<16x1xf32>
    %cst_166 = arith.constant 3.200000e+01 : f32
    %351 = vector.broadcast %cst_166 : f32 to vector<16x1xf32>
    %352 = arith.divf %350, %351 : vector<16x1xf32>
    %cst_167 = arith.constant 9.99999974E-6 : f32
    %353 = vector.broadcast %cst_167 : f32 to vector<16x1xf32>
    %354 = arith.addf %352, %353 : vector<16x1xf32>
    %355 = math.rsqrt %354 : vector<16x1xf32>
    %356 = vector.broadcast %355 : vector<16x1xf32> to vector<16x32xf32>
    %357 = arith.mulf %347, %356 : vector<16x32xf32>
    %358 = vector.broadcast %339 : vector<1x32xf32> to vector<16x32xf32>
    %359 = arith.mulf %357, %358 : vector<16x32xf32>
    %360 = vector.broadcast %341 : vector<1x32xf32> to vector<16x32xf32>
    %361 = arith.addf %359, %360 : vector<16x32xf32>
    %362 = vector.extract_strided_slice %361 {offsets = [0, 0], sizes = [1, 32], strides = [1, 1]} : vector<16x32xf32> to vector<1x32xf32>
    %c0_168 = arith.constant 0 : index
    %c0_169 = arith.constant 0 : index
    %363 = vector.load %arg16[%c0_168, %c0_169] : memref<32x128xf32, #tpu.memory_space<vmem>>, vector<32x128xf32>
    %cst_170 = arith.constant dense<0.000000e+00> : vector<1x128xf32>
    %364 = tpu.matmul %362, %363, %cst_170 {dimension_numbers = #tpu.dot_dimension_numbers<[1], [0], [0], [1], [0, 0, 1, 1], [], []>} : vector<1x32xf32>, vector<32x128xf32>, vector<1x128xf32> -> vector<1x128xf32>
    %c0_171 = arith.constant 0 : index
    %c0_172 = arith.constant 0 : index
    %365 = vector.load %arg17[%c0_171, %c0_172] : memref<1x128xf32, #tpu.memory_space<vmem>>, vector<1x128xf32>
    %366 = arith.addf %364, %365 : vector<1x128xf32>
    %c0_173 = arith.constant 0 : index
    %c0_174 = arith.constant 0 : index
    %367 = vector.load %arg18[%c0_173, %c0_174] : memref<2x128xf32, #tpu.memory_space<vmem>>, vector<1x128xf32>
    tpu.vector_store %arg18[%c0_173, %c0_174], %366 {strides = array<i32>} : memref<2x128xf32, #tpu.memory_space<vmem>>, vector<1x128xf32>,
    %368 = vector.extract_strided_slice %361 {offsets = [8, 0], sizes = [1, 32], strides = [1, 1]} : vector<16x32xf32> to vector<1x32xf32>
    %c0_175 = arith.constant 0 : index
    %c0_176 = arith.constant 0 : index
    %369 = vector.load %arg16[%c0_175, %c0_176] : memref<32x128xf32, #tpu.memory_space<vmem>>, vector<32x128xf32>
    %cst_177 = arith.constant dense<0.000000e+00> : vector<1x128xf32>
    %370 = tpu.matmul %368, %369, %cst_177 {dimension_numbers = #tpu.dot_dimension_numbers<[1], [0], [0], [1], [0, 0, 1, 1], [], []>} : vector<1x32xf32>, vector<32x128xf32>, vector<1x128xf32> -> vector<1x128xf32>
    %c0_178 = arith.constant 0 : index
    %c0_179 = arith.constant 0 : index
    %371 = vector.load %arg17[%c0_178, %c0_179] : memref<1x128xf32, #tpu.memory_space<vmem>>, vector<1x128xf32>
    %372 = arith.addf %370, %371 : vector<1x128xf32>
    %c1_180 = arith.constant 1 : index
    %c0_181 = arith.constant 0 : index
    %373 = vector.load %arg18[%c1_180, %c0_181] : memref<2x128xf32, #tpu.memory_space<vmem>>, vector<1x128xf32>
    tpu.vector_store %arg18[%c1_180, %c0_181], %372 {strides = array<i32>} : memref<2x128xf32, #tpu.memory_space<vmem>>, vector<1x128xf32>,
    return
  }
}

</mosaic_0001>

<bundles_post_ra>
// kernel: essay_scoring_forward.1
= control target key start
LH: loop header
LB: loop body
LE: loop exit
PB: predicated region body
PF: predicated region fallthrough
CT: control target
= control target key end

     0   :  { %s2022_s0 = inlined_call_operand.vmem [shape: f32[16,32], index: 0, kind: input, shape index: {}]   ;;  %s2023_s1 = inlined_call_operand.vmem [shape: f32[2,8], index: 1, kind: input, shape index: {}]   ;;  %s2024_s2 = inlined_call_operand.vmem [shape: f32[1,32], index: 2, kind: input, shape index: {}]   ;;  %s2025_s3 = inlined_call_operand.vmem [shape: f32[1,32], index: 3, kind: input, shape index: {}]   ;;  %s2026_s4 = inlined_call_operand.vmem [shape: f32[2,32,96], index: 4, kind: input, shape index: {}]   ;;  %s2027_s5 = inlined_call_operand.vmem [shape: f32[2,1,96], index: 5, kind: input, shape index: {}]   ;;  %s2028_s6 = inlined_call_operand.vmem [shape: f32[2,32,32], index: 6, kind: input, shape index: {}]   ;;  %s2029_s7 = inlined_call_operand.vmem [shape: f32[2,1,32], index: 7, kind: input, shape index: {}]   ;;  %s2030_s8 = inlined_call_operand.vmem [shape: f32[2,1,32], index: 8, kind: input, shape index: {}]   ;;  %s2031_s9 = inlined_call_operand.vmem [shape: f32[2,1,32], index: 9, kind: input, shape index: {}]   ;;  %s2032_s10 = inlined_call_operand.vmem [shape: f32[2,32,64], index: 10, kind: input, shape index: {}]   ;;  %s2033_s11 = inlined_call_operand.vmem [shape: f32[2,1,64], index: 11, kind: input, shape index: {}]   ;;  %s2034_s12 = inlined_call_operand.vmem [shape: f32[2,64,32], index: 12, kind: input, shape index: {}]   ;;  %s2035_s13 = inlined_call_operand.vmem [shape: f32[2,1,32], index: 13, kind: input, shape index: {}]   ;;  %s2036_s14 = inlined_call_operand.vmem [shape: f32[2,1,32], index: 14, kind: input, shape index: {}]   ;;  %s2037_s15 = inlined_call_operand.vmem [shape: f32[2,1,32], index: 15, kind: input, shape index: {}]   ;;  %s2038_s16 = inlined_call_operand.vmem [shape: f32[32,128], index: 16, kind: input, shape index: {}]   ;;  %s2039_s17 = inlined_call_operand.vmem [shape: f32[1,128], index: 17, kind: input, shape index: {}]   ;;  %s2040_s18 = inlined_call_operand.hbm [shape: f32[2,128], index: 18, kind: output, shape index: {}]  }
   0x1   :  { %2042 = sst [smem:[#allocation6_spill]] %s2022_s0 }
   0x2   :  { %2043 = sst [smem:[#allocation7_spill]] %s2023_s1 }
   0x3   :  { %2044 = sst [smem:[#allocation8_spill]] %s2024_s2 }
   0x4   :  { %s2045_s29 = sld [smem:[#allocation6_spill]]  ;;  %vm65_vm0 = vcmask 261120  }
   0xa   :  { %v61_v0 = vld [vmem:[%s2045_s29] sm:$0xff]  ;;  %v62_v1 = vld [vmem:[%s2045_s29 + $0x8] sm:$0xff] }
   0xb   :  { %v66_v2 = vsel %vm65_vm0, %v61_v0, 0.0  ;;  %v69_v3 = vsel %vm65_vm0, %v62_v1, 0.0 }
   0xc   :  { %67 = vadd.xlane.f32.xlu0 %v66_v2  ;;  %70 = vadd.xlane.f32.xlu1 %v69_v3 }
   0xd   :  { %23 = vsyncpa [#allocation4], 0  ;;  %v1519_v4 = vmov 32.0   ;;  %v130_v21 = vld [vmem:[%s2026_s4 + $0x18] sm:$0xff]  ;;  %v129_v22 = vld [vmem:[%s2026_s4 + $0x10] sm:$0xff]  ;;  %s2046_s27 = sld [smem:[#allocation8_spill]] }
   0xe   :  { %1431 = vrcp.f32 %v1519_v4  ;;  %153 = vmatpush.msra.mxu0 %v130_v21  ;;  %v128_v23 = vld [vmem:[%s2026_s4 + $0x8] sm:$0xff]  ;;  %v127_v24 = vld [vmem:[%s2026_s4] sm:$0xff]  ;;  %s1521_s19 = smov 96   ;;  %s1522_s1 = smov 80   ;;  %vm168_vm8 = vcmask 130048   ;;  %vm193_vm9 = vcmask 64512  }
   0xf   :  { %v1414_v46 = vld [vmem:[%s2025_s3] ss:$0 sm:$0xff]  ;;  %s1520_s3 = smov 112   ;;  %s2047_s22 = sld [smem:[#allocation7_spill]]  ;;  %vm301_vm10 = vcmask 261248   ;;  %vm603_vm14 = vcmask 523264  }
  0x10   :  { %154 = vmatpush.msra.mxu0 %v129_v22  ;;  %v1415_v53 = vld [vmem:[%s2027_s5] ss:$0 sm:$0xff]  ;;  %s1523_s2 = smov 64   ;;  %s1524_s23 = smov 48  }
  0x11   :  { %s1525_s24 = smov 16   ;;  %s1526_s30 = smov [#allocation3]  }
  0x12   :  { %155 = vmatpush.msra.mxu0 %v128_v23  ;;  %s1324_s0 = sshll.u32 %s1526_s30, 4  ;;  %s1325_s0 = int_to_ptr.vmem [resolvable:$true] %s1324_s0 }
  0x13   :  { %v1413_v42 = vld [vmem:[%s2046_s27] ss:$0 sm:$0xff] }
  0x14   :  { %v1432_v5 = vpop.eup %1431  ;;  %156 = vmatpush.msra.mxu0 %v127_v24 }
  0x15   :  { %v73_v6 = vmul.f32 32.0, %v1432_v5  ;;  %vm77_vm1 = vweird.f32 %v1432_v5  ;;  %v60_v60 = vld [vmem:[%s2047_s22] sm:$0x3] }
  0x16   :  { %v1677_v61 = vperm.slane %v60_v60, 0  ;;  %v1700_v23 = vperm.slane %v60_v60, 1  ;;  %v1735_v60 = vld [vmem:[%s2029_s7] ss:$0 sm:$0xff] }
  0x17   :  { %v74_v7 = vsub.f32 1.0, %v73_v6 }
  0x19   :  { %v75_v8 = vmul.f32 %v1432_v5, %v74_v7 }
  0x1b   :  { %v76_v9 = vadd.f32 %v1432_v5, %v75_v8 }
  0x1d   :  { %v1630_v10 = vsel %vm77_vm1, %v1432_v5, %v76_v9 }
  0x7f   :  { %v68_v11 = vpop.xlane.xlu0 %67  ;;  %v71_v12 = vpop.xlane.xlu1 %70 }
  0x80   :  { %v79_v13 = vmul.f32 %v1630_v10, %v68_v11  ;;  %v80_v14 = vmul.f32 %v1630_v10, %v71_v12 }
  0x82   :  { %v81_v15 = vsub.f32 %v61_v0, %v79_v13  ;;  %v82_v16 = vsub.f32 %v62_v1, %v80_v14 }
  0x84   :  { %v83_v17 = vmul.f32 %v81_v15, %v81_v15  ;;  %v84_v18 = vmul.f32 %v82_v16, %v82_v16 }
  0x86   :  { %v85_v19 = vsel %vm65_vm0, %v83_v17, 0.0  ;;  %v88_v20 = vsel %vm65_vm0, %v84_v18, 0.0 }
  0x87   :  { %86 = vadd.xlane.f32.xlu0 %v85_v19  ;;  %89 = vadd.xlane.f32.xlu1 %v88_v20 }
  0xfa   :  { %v87_v25 = vpop.xlane.xlu0 %86  ;;  %v90_v26 = vpop.xlane.xlu1 %89 }
  0xfb   :  { %v91_v27 = vmul.f32 %v87_v25, %v1630_v10  ;;  %v92_v28 = vmul.f32 %v90_v26, %v1630_v10 }
  0xfd   :  { %v93_v29 = vadd.f32 1e-05, %v91_v27  ;;  %v94_v30 = vadd.f32 1e-05, %v92_v28 }
  0xff   :  { %1433 = vrsqrt.f32 %v93_v29  ;;  %vm111_vm2 = vweird.f32 %v94_v30  ;;  %vm101_vm5 = vweird.f32 %v93_v29 }
 0x100   :  { %1435 = vrsqrt.f32 %v94_v30 }
 0x105   :  { %v1434_v31 = vpop.eup %1433 }
 0x106   :  { %v1436_v32 = vpop.eup %1435  ;;  %v96_v33 = vmul.f32 %v1434_v31, %v93_v29  ;;  %vm102_vm4 = vweird.f32 %v1434_v31 }
 0x107   :  { %v106_v34 = vmul.f32 %v1436_v32, %v94_v30  ;;  %vm112_vm3 = vweird.f32 %v1436_v32  ;;  %vm103_vm7 = vmor %vm101_vm5, %vm102_vm4 }
 0x108   :  { %v97_v35 = vmul.f32 %v1434_v31, %v96_v33  ;;  %vm113_vm6 = vmor %vm111_vm2, %vm112_vm3 }
 0x109   :  { %v107_v36 = vmul.f32 %v1436_v32, %v106_v34 }
 0x10a   :  { %v98_v37 = vmul.f32 0.5, %v97_v35 }
 0x10b   :  { %v108_v38 = vmul.f32 0.5, %v107_v36 }
 0x10c   :  { %v99_v39 = vsub.f32 1.5, %v98_v37 }
 0x10d   :  { %v109_v40 = vsub.f32 1.5, %v108_v38 }
 0x10e   :  { %v100_v41 = vmul.f32 %v1434_v31, %v99_v39 }
 0x10f   :  { %v110_v43 = vmul.f32 %v1436_v32, %v109_v40 }
 0x110   :  { %v104_v44 = vsel %vm103_vm7, %v1434_v31, %v100_v41 }
 0x111   :  { %v115_v45 = vmul.f32 %v104_v44, %v81_v15  ;;  %v114_v47 = vsel %vm113_vm6, %v1436_v32, %v110_v43  ;;  %v443_v43 = vld [vmem:[%s2028_s6 + $0x10] sm:$0xff]  ;;  %v442_v44 = vld [vmem:[%s2028_s6 + $0x8] sm:$0xff] }
 0x112   :  { %v116_v49 = vmul.f32 %v114_v47, %v82_v16 }
 0x113   :  { %v120_v48 = vmul.f32 %v1413_v42, %v115_v45  ;;  %v441_v45 = vld [vmem:[%s2028_s6] sm:$0xff] }
 0x114   :  { %v121_v51 = vmul.f32 %v1413_v42, %v116_v49  ;;  %v444_v42 = vld [vmem:[%s2028_s6 + $0x18] sm:$0xff] }
 0x115   :  { %v1656_v50 = vadd.f32 %v1414_v46, %v120_v48 }
 0x116   :  { %v1660_v52 = vadd.f32 %v1414_v46, %v121_v51 }
 0x117   :  { %1335 = vmatmul.msk.f32.vlgmr.msra.gmra.mxu0 %vm65_vm0, %v1656_v50 }
 0x11f   :  { %1336 = vmatmul.msk.f32.gmra.mxu0 %vm65_vm0, %v1660_v52 }
 0x194   :  { %v158_v54 = vpop.f32.mrf.mxu0 }
 0x195   :  { %v159_v55 = vadd.f32 %v1415_v53, %v158_v54 }
 0x197   :  { %232 = vrot.lane.b32.xlu0 %v159_v55, %s1520_s3  ;;  %166 = vrot.lane.b32.xlu2 %v159_v55, %s1521_s19 }
 0x19c   :  { %v161_v59 = vpop.f32.mrf.mxu0 }
 0x19d   :  { %v1681_v1 = vadd.f32 %v1415_v53, %v161_v59 }
 0x19f   :  { %234 = vrot.lane.b32.xlu2 %v159_v55, %s1522_s1 }
 0x1f1   :  { %v167_v56 = vpop.permute.xlu2 %166 }
 0x1f2   :  { %1337 = vmatpush.xpose.msk.msrb.mxu0 %vm168_vm8, %v167_v56 }
 0x1f5   :  { %1338 = vmatmul.msk.f32.vlgmr.msrb.gmra.mxu0 %vm168_vm8, %v159_v55 }
 0x1f9   :  { %v235_v57 = vpop.permute.xlu2 %234 }
 0x1fa   :  { %1340 = vmatpush.xpose.msk.msra.mxu3 %vm168_vm8, %v235_v57 }
 0x209   :  { %v233_v58 = vpop.permute.xlu0 %232 }
 0x20a   :  { %1341 = vmatmul.msk.f32.vlgmr.msra.gmra.mxu3 %vm168_vm8, %v233_v58 }
 0x272   :  { %v190_v62 = vpop.f32.mrf.mxu0 }
 0x273   :  { %v191_v63 = vadd.f32 %v190_v62, %v1677_v61 }
 0x275   :  { %v194_v0 = vsel %vm193_vm9, %v191_v63, -inf }
 0x276   :  { %195 = vmax.xlane.f32.xlu1 %v194_v0 }
 0x28d   :  { %v257_v2 = vpop.f32.mrf.mxu3 }
 0x28e   :  { %v258_v3 = vadd.f32 %v257_v2, %v1677_v61 }
 0x28f   :  { %305 = vrot.lane.b32.xlu1 %v1681_v1, %s1521_s19 }
 0x290   :  { %v260_v4 = vsel %vm193_vm9, %v258_v3, -inf }
 0x291   :  { %261 = vmax.xlane.f32.xlu2 %v260_v4 }
 0x2a9   :  { %205 = vrot.lane.b32.xlu2 %v159_v55, %s1523_s2 }
 0x2b1   :  { %371 = vrot.lane.b32.xlu2 %v1681_v1, %s1522_s1 }
 0x2b9   :  { %369 = vrot.lane.b32.xlu2 %v1681_v1, %s1520_s3 }
 0x2e9   :  { %v196_v5 = vpop.xlane.xlu1 %195 }
 0x2ea   :  { %v197_v6 = vsub.f32 %v191_v63, %v196_v5 }
 0x2ec   :  { %v198_v7 = vmul.f32 1.442695, %v197_v6 }
 0x2ee   :  { %1437 = vpow2.f32 %v198_v7 }
 0x2f4   :  { %v1438_v8 = vpop.eup %1437 }
 0x2f5   :  { %v200_v9 = vsel %vm193_vm9, %v1438_v8, 0.0 }
 0x2f6   :  { %201 = vadd.xlane.f32.xlu0 %v200_v9 }
 0x301   :  { %v306_v11 = vpop.permute.xlu1 %305 }
 0x302   :  { %1343 = vmatpush.xpose.msk.msra.mxu1 %vm168_vm8, %v306_v11 }
 0x304   :  { %v262_v12 = vpop.xlane.xlu2 %261 }
 0x305   :  { %v263_v13 = vsub.f32 %v258_v3, %v262_v12  ;;  %1344 = vmatmul.msk.f32.vlgmr.msra.gmra.mxu1 %vm168_vm8, %v1681_v1  ;;  %v538_v12 = vld [vmem:[%s2032_s10 + $0x10] sm:$0xff] }
 0x307   :  { %v264_v14 = vmul.f32 1.442695, %v263_v13  ;;  %v537_v13 = vld [vmem:[%s2032_s10 + $0x8] sm:$0xff] }
 0x309   :  { %1439 = vpow2.f32 %v264_v14  ;;  %v536_v14 = vld [vmem:[%s2032_s10] sm:$0xff] }
 0x30a   :  { %271 = vrot.lane.b32.xlu0 %v159_v55, %s1524_s23 }
 0x30c   :  { %v206_v15 = vpop.permute.xlu2 %205 }
 0x30d   :  { %226 = vmatpush.msra.mxu2 %v206_v15 }
 0x30f   :  { %v1440_v16 = vpop.eup %1439 }
 0x310   :  { %v266_v17 = vsel %vm193_vm9, %v1440_v16, 0.0 }
 0x311   :  { %267 = vadd.xlane.f32.xlu1 %v266_v17 }
 0x314   :  { %v372_v22 = vpop.permute.xlu2 %371 }
 0x31c   :  { %v370_v30 = vpop.permute.xlu2 %369 }
 0x369   :  { %v202_v18 = vpop.xlane.xlu0 %201 }
 0x36a   :  { %1441 = vrcp.f32 %v202_v18 }
 0x370   :  { %v1442_v19 = vpop.eup %1441 }
 0x371   :  { %v204_v20 = vmul.f32 %v1442_v19, %v1438_v8 }
 0x373   :  { %1339 = vmatmul.msk.f32.vlgmr.msra.gmra.mxu2 %vm193_vm9, %v204_v20 }
 0x37c   :  { %v272_v21 = vpop.permute.xlu0 %271 }
 0x37d   :  { %292 = vmatpush.msrb.mxu2 %v272_v21 }
 0x37f   :  { %1346 = vmatpush.xpose.msk.msra.mxu2 %vm168_vm8, %v372_v22 }
 0x382   :  { %v328_v24 = vpop.f32.mrf.mxu1 }
 0x383   :  { %v329_v25 = vadd.f32 %v328_v24, %v1700_v23 }
 0x384   :  { %v268_v26 = vpop.xlane.xlu1 %267 }
 0x385   :  { %1443 = vrcp.f32 %v268_v26  ;;  %v331_v27 = vsel %vm193_vm9, %v329_v25, -inf }
 0x386   :  { %332 = vmax.xlane.f32.xlu1 %v331_v27  ;;  %v1762_v27 = vld [vmem:[%s2030_s8] ss:$0 sm:$0xff] }
 0x38b   :  { %v1444_v28 = vpop.eup %1443 }
 0x38c   :  { %v270_v29 = vmul.f32 %v1444_v28, %v1440_v16 }
 0x38e   :  { %1342 = vmatmul.msk.f32.vlgmr.msrb.gmra.mxu2 %vm193_vm9, %v270_v29 }
 0x396   :  { %1347 = vmatmul.msk.f32.vlgmr.msra.gmra.mxu2 %vm168_vm8, %v370_v30  ;;  %v1767_v30 = vld [vmem:[%s2031_s9] ss:$0 sm:$0xff] }
 0x39f   :  { %342 = vrot.lane.b32.xlu1 %v1681_v1, %s1523_s2 }
 0x3f6   :  { %v228_v31 = vpop.f32.mrf.mxu2 }
 0x3f7   :  { %231 = vst.msk [vmem:[#allocation2] sm:$0xff] %vm168_vm8, %v228_v31 }
 0x3f9   :  { %v333_v32 = vpop.xlane.xlu1 %332 }
 0x3fa   :  { %v334_v33 = vsub.f32 %v329_v25, %v333_v32 }
 0x3fc   :  { %v335_v34 = vmul.f32 1.442695, %v334_v33  ;;  %v598_v33 = vld [vmem:[%s2034_s12 + $0x38] sm:$0xff] }
 0x3fd   :  { %618 = vmatpush.msrb.mxu2 %v598_v33 }
 0x3fe   :  { %1445 = vpow2.f32 %v335_v34  ;;  %v597_v34 = vld [vmem:[%s2034_s12 + $0x30] sm:$0xff] }
 0x3ff   :  { %619 = vmatpush.msrb.mxu2 %v597_v34 }
 0x404   :  { %v1446_v35 = vpop.eup %1445 }
 0x405   :  { %v337_v36 = vsel %vm193_vm9, %v1446_v35, 0.0 }
 0x406   :  { %338 = vadd.xlane.f32.xlu0 %v337_v36  ;;  %v595_v36 = vld [vmem:[%s2034_s12 + $0x20] sm:$0xff] }
 0x411   :  { %v294_v37 = vpop.f32.mrf.mxu2  ;;  %v343_v38 = vpop.permute.xlu1 %342 }
 0x412   :  { %298 = vrot.lane.b32.xlu1 %v294_v37, %s1525_s24  ;;  %363 = vmatpush.msrb.mxu3 %v343_v38  ;;  %v594_v37 = vld [vmem:[%s2034_s12 + $0x18] sm:$0xff]  ;;  %v593_v38 = vld [vmem:[%s2034_s12 + $0x10] sm:$0xff] }
 0x414   :  { %467 = vmatpush.msra.mxu3 %v444_v42 }
 0x416   :  { %468 = vmatpush.msra.mxu3 %v443_v43 }
 0x418   :  { %469 = vmatpush.msra.mxu3 %v442_v44 }
 0x419   :  { %v394_v39 = vpop.f32.mrf.mxu2 }
 0x41a   :  { %v395_v40 = vadd.f32 %v394_v39, %v1700_v23  ;;  %470 = vmatpush.msra.mxu3 %v441_v45  ;;  %v592_v39 = vld [vmem:[%s2034_s12 + $0x8] sm:$0xff]  ;;  %v1419_v45 = vld [vmem:[%s2033_s11] ss:$0 sm:$0xff] }
 0x41c   :  { %v397_v41 = vsel %vm193_vm9, %v395_v40, -inf }
 0x41d   :  { %398 = vmax.xlane.f32.xlu2 %v397_v41  ;;  %v591_v41 = vld [vmem:[%s2034_s12] sm:$0xff] }
 0x435   :  { %408 = vrot.lane.b32.xlu2 %v1681_v1, %s1524_s23 }
 0x479   :  { %v339_v46 = vpop.xlane.xlu0 %338 }
 0x47a   :  { %1447 = vrcp.f32 %v339_v46 }
 0x480   :  { %v1448_v47 = vpop.eup %1447 }
 0x481   :  { %v341_v48 = vmul.f32 %v1448_v47, %v1446_v35  ;;  %v596_v35 = vld [vmem:[%s2034_s12 + $0x28] sm:$0xff] }
 0x482   :  { %620 = vmatpush.msrb.mxu2 %v596_v35 }
 0x483   :  { %1345 = vmatmul.msk.f32.vlgmr.msrb.gmra.mxu3 %vm193_vm9, %v341_v48 }
 0x484   :  { %v299_v49 = vpop.permute.xlu1 %298  ;;  %621 = vmatpush.msrb.mxu2 %v595_v36 }
 0x485   :  { %302 = vst.msk [vmem:[#allocation2] sm:$0xff] %vm301_vm10, %v299_v49 }
 0x486   :  { %622 = vmatpush.msrb.mxu2 %v594_v37 }
 0x488   :  { %623 = vmatpush.msrb.mxu2 %v593_v38 }
 0x48a   :  { %624 = vmatpush.msrb.mxu2 %v592_v39 }
 0x48c   :  { %v439_v51 = vld [vmem:[#allocation2] sm:$0xff]  ;;  %625 = vmatpush.msrb.mxu2 %v591_v41 }
 0x48d   :  { %1349 = vmatmul.msk.f32.vlgmr.msra.gmra.mxu3 %vm65_vm0, %v439_v51 }
 0x490   :  { %v399_v53 = vpop.xlane.xlu2 %398 }
 0x491   :  { %v400_v54 = vsub.f32 %v395_v40, %v399_v53 }
 0x493   :  { %v401_v55 = vmul.f32 1.442695, %v400_v54 }
 0x495   :  { %1449 = vpow2.f32 %v401_v55 }
 0x498   :  { %v409_v56 = vpop.permute.xlu2 %408 }
 0x499   :  { %429 = vmatpush.msrb.mxu1 %v409_v56 }
 0x49b   :  { %v1450_v57 = vpop.eup %1449 }
 0x49c   :  { %v403_v58 = vsel %vm193_vm9, %v1450_v57, 0.0 }
 0x49d   :  { %404 = vadd.xlane.f32.xlu1 %v403_v58 }
 0x506   :  { %v365_v59 = vpop.f32.mrf.mxu3 }
 0x507   :  { %368 = vst.msk [vmem:[#allocation2 + $0x8] sm:$0xff] %vm168_vm8, %v365_v59 }
 0x510   :  { %v472_v62 = vpop.f32.mrf.mxu3  ;;  %v405_v63 = vpop.xlane.xlu1 %404 }
 0x511   :  { %v473_v0 = vadd.f32 %v1735_v60, %v472_v62  ;;  %1451 = vrcp.f32 %v405_v63 }
 0x513   :  { %v478_v1 = vadd.f32 %v473_v0, %v1656_v50  ;;  %v539_v50 = vld [vmem:[%s2032_s10 + $0x18] sm:$0xff]  ;;  %v1808_v0 = vld [vmem:[%s2035_s13] ss:$0 sm:$0xff] }
 0x514   :  { %562 = vmatpush.msra.mxu0 %v539_v50 }
 0x515   :  { %v482_v2 = vsel %vm65_vm0, %v478_v1, 0.0 }
 0x516   :  { %483 = vadd.xlane.f32.xlu0 %v482_v2  ;;  %563 = vmatpush.msra.mxu0 %v538_v12 }
 0x517   :  { %v1452_v3 = vpop.eup %1451 }
 0x518   :  { %v407_v4 = vmul.f32 %v1452_v3, %v1450_v57  ;;  %564 = vmatpush.msra.mxu0 %v537_v13 }
 0x51a   :  { %1348 = vmatmul.msk.f32.vlgmr.msrb.gmra.mxu1 %vm193_vm9, %v407_v4  ;;  %565 = vmatpush.msra.mxu0 %v536_v14 }
 0x589   :  { %v484_v5 = vpop.xlane.xlu0 %483 }
 0x58a   :  { %v488_v6 = vmul.f32 %v484_v5, %v1630_v10 }
 0x58c   :  { %v490_v7 = vsub.f32 %v478_v1, %v488_v6 }
 0x58e   :  { %v492_v8 = vmul.f32 %v490_v7, %v490_v7 }
 0x590   :  { %v494_v9 = vsel %vm65_vm0, %v492_v8, 0.0 }
 0x591   :  { %495 = vadd.xlane.f32.xlu2 %v494_v9 }
 0x597   :  { %v431_v11 = vpop.f32.mrf.mxu1 }
 0x598   :  { %435 = vrot.lane.b32.xlu0 %v431_v11, %s1525_s24 }
 0x604   :  { %v496_v15 = vpop.xlane.xlu2 %495 }
 0x605   :  { %v500_v16 = vmul.f32 %v496_v15, %v1630_v10 }
 0x607   :  { %v502_v17 = vadd.f32 1e-05, %v500_v16 }
 0x609   :  { %1453 = vrsqrt.f32 %v502_v17  ;;  %vm510_vm12 = vweird.f32 %v502_v17 }
 0x60a   :  { %v436_v18 = vpop.permute.xlu0 %435 }
 0x60b   :  { %438 = vst.msk [vmem:[#allocation2 + $0x8] sm:$0xff] %vm301_vm10, %v436_v18 }
 0x60f   :  { %v1454_v19 = vpop.eup %1453 }
 0x610   :  { %v505_v20 = vmul.f32 %v1454_v19, %v502_v17  ;;  %vm511_vm11 = vweird.f32 %v1454_v19 }
 0x611   :  { %vm512_vm13 = vmor %vm510_vm12, %vm511_vm11 }
 0x612   :  { %v506_v21 = vmul.f32 %v1454_v19, %v505_v20  ;;  %v440_v22 = vld [vmem:[#allocation2 + $0x8] sm:$0xff] }
 0x613   :  { %1350 = vmatmul.msk.f32.gmra.mxu3 %vm65_vm0, %v440_v22 }
 0x614   :  { %v507_v24 = vmul.f32 0.5, %v506_v21 }
 0x616   :  { %v508_v25 = vsub.f32 1.5, %v507_v24 }
 0x618   :  { %v509_v26 = vmul.f32 %v1454_v19, %v508_v25  ;;  %v1358_v25 = vld [vmem:[%s2026_s4 + $0x38] sm:$0xff] }
 0x619   :  { %719 = vmatpush.msra.mxu1 %v1358_v25 }
 0x61a   :  { %v513_v28 = vsel %vm512_vm13, %v1454_v19, %v509_v26 }
 0x61b   :  { %v524_v29 = vmul.f32 %v513_v28, %v490_v7 }
 0x61d   :  { %v529_v31 = vmul.f32 %v1762_v27, %v524_v29  ;;  %v1356_v29 = vld [vmem:[%s2026_s4 + $0x28] sm:$0xff] }
 0x61f   :  { %v534_v32 = vadd.f32 %v1767_v30, %v529_v31 }
 0x621   :  { %1351 = vmatmul.msk.f32.vlgmr.msra.gmra.mxu0 %vm65_vm0, %v534_v32 }
 0x696   :  { %v475_v40 = vpop.f32.mrf.mxu3 }
 0x697   :  { %v476_v42 = vadd.f32 %v1735_v60, %v475_v40 }
 0x699   :  { %v479_v43 = vadd.f32 %v476_v42, %v1660_v52 }
 0x69b   :  { %v485_v44 = vsel %vm65_vm0, %v479_v43, 0.0 }
 0x69c   :  { %486 = vadd.xlane.f32.xlu0 %v485_v44 }
 0x69e   :  { %v567_v46 = vpop.f32.mrf.mxu0 }
 0x69f   :  { %v568_v47 = vadd.f32 %v1419_v45, %v567_v46 }
 0x6a1   :  { %v573_v48 = vmul.f32 %v568_v47, %v568_v47 }
 0x6a3   :  { %v575_v49 = vmul.f32 %v573_v48, %v568_v47  ;;  %v1421_v48 = vld [vmem:[%s2036_s14] ss:$0 sm:$0xff] }
 0x6a5   :  { %v577_v51 = vmul.f32 0.044715, %v575_v49 }
 0x6a7   :  { %v579_v53 = vadd.f32 %v577_v51, %v568_v47 }
 0x6a9   :  { %v581_v54 = vmul.f32 0.7978846, %v579_v53  ;;  %v1422_v53 = vld [vmem:[%s2037_s15] ss:$0 sm:$0xff] }
 0x6ab   :  { %1455 = vtanh.f32 %v581_v54 }
 0x6b1   :  { %v1456_v55 = vpop.eup %1455 }
 0x6b2   :  { %v585_v56 = vadd.f32 1.0, %v1456_v55 }
 0x6b4   :  { %v587_v57 = vmul.f32 0.5, %v585_v56 }
 0x6b6   :  { %v589_v52 = vmul.f32 %v587_v57, %v568_v47 }
 0x6b8   :  { %1353 = vmatmul.msk.f32.vlgmr.msrb.gmra.mxu2 %vm603_vm14, %v589_v52 }
 0x70f   :  { %v487_v58 = vpop.xlane.xlu0 %486 }
 0x710   :  { %v489_v59 = vmul.f32 %v487_v58, %v1630_v10 }
 0x712   :  { %v491_v60 = vsub.f32 %v479_v43, %v489_v59  ;;  %v1423_v59 = vld [vmem:[%s2027_s5 + $0x1] ss:$0 sm:$0xff] }
 0x714   :  { %v493_v62 = vmul.f32 %v491_v60, %v491_v60 }
 0x716   :  { %v497_v63 = vsel %vm65_vm0, %v493_v62, 0.0 }
 0x717   :  { %498 = vadd.xlane.f32.xlu1 %v497_v63 }
 0x73b   :  { %v627_v1 = vpop.f32.mrf.mxu2 }
 0x73c   :  { %v628_v2 = vadd.f32 %v1808_v0, %v627_v1 }
 0x73e   :  { %v633_v3 = vadd.f32 %v628_v2, %v534_v32 }
 0x740   :  { %v637_v4 = vsel %vm65_vm0, %v633_v3, 0.0 }
 0x741   :  { %638 = vadd.xlane.f32.xlu1 %v637_v4 }
 0x78a   :  { %v499_v5 = vpop.xlane.xlu1 %498 }
 0x78b   :  { %v501_v6 = vmul.f32 %v499_v5, %v1630_v10 }
 0x78d   :  { %v503_v7 = vadd.f32 1e-05, %v501_v6 }
 0x78f   :  { %1457 = vrsqrt.f32 %v503_v7  ;;  %vm520_vm1 = vweird.f32 %v503_v7 }
 0x795   :  { %v1458_v8 = vpop.eup %1457 }
 0x796   :  { %v515_v9 = vmul.f32 %v1458_v8, %v503_v7  ;;  %vm521_vm15 = vweird.f32 %v1458_v8 }
 0x797   :  { %vm522_vm2 = vmor %vm520_vm1, %vm521_vm15 }
 0x798   :  { %v516_v11 = vmul.f32 %v1458_v8, %v515_v9 }
 0x79a   :  { %v517_v50 = vmul.f32 0.5, %v516_v11 }
 0x79c   :  { %v518_v12 = vsub.f32 1.5, %v517_v50 }
 0x79e   :  { %v519_v13 = vmul.f32 %v1458_v8, %v518_v12 }
 0x7a0   :  { %v523_v14 = vsel %vm522_vm2, %v1458_v8, %v519_v13 }
 0x7a1   :  { %v525_v15 = vmul.f32 %v523_v14, %v491_v60 }
 0x7a3   :  { %v530_v16 = vmul.f32 %v1762_v27, %v525_v15  ;;  %v1357_v27 = vld [vmem:[%s2026_s4 + $0x30] sm:$0xff] }
 0x7a4   :  { %720 = vmatpush.msra.mxu1 %v1357_v27 }
 0x7a5   :  { %v535_v17 = vadd.f32 %v1767_v30, %v530_v16  ;;  %v1355_v30 = vld [vmem:[%s2026_s4 + $0x20] sm:$0xff] }
 0x7a6   :  { %721 = vmatpush.msra.mxu1 %v1356_v29 }
 0x7a7   :  { %1352 = vmatmul.msk.f32.gmra.mxu0 %vm65_vm0, %v535_v17 }
 0x7a8   :  { %722 = vmatpush.msra.mxu1 %v1355_v30 }
 0x7b4   :  { %v639_v18 = vpop.xlane.xlu1 %638 }
 0x7b5   :  { %v643_v19 = vmul.f32 %v639_v18, %v1630_v10 }
 0x7b7   :  { %v645_v20 = vsub.f32 %v633_v3, %v643_v19 }
 0x7b9   :  { %v647_v21 = vmul.f32 %v645_v20, %v645_v20 }
 0x7bb   :  { %v649_v22 = vsel %vm65_vm0, %v647_v21, 0.0 }
 0x7bc   :  { %650 = vadd.xlane.f32.xlu1 %v649_v22 }
 0x824   :  { %v570_v24 = vpop.f32.mrf.mxu0 }
 0x825   :  { %v571_v26 = vadd.f32 %v1419_v45, %v570_v24 }
 0x827   :  { %v574_v28 = vmul.f32 %v571_v26, %v571_v26 }
 0x829   :  { %v576_v31 = vmul.f32 %v574_v28, %v571_v26 }
 0x82b   :  { %v578_v32 = vmul.f32 0.044715, %v576_v31 }
 0x82d   :  { %v580_v33 = vadd.f32 %v578_v32, %v571_v26 }
 0x82f   :  { %v651_v34 = vpop.xlane.xlu1 %650  ;;  %v582_v35 = vmul.f32 0.7978846, %v580_v33 }
 0x830   :  { %v655_v36 = vmul.f32 %v651_v34, %v1630_v10 }
 0x831   :  { %1459 = vtanh.f32 %v582_v35 }
 0x832   :  { %v657_v37 = vadd.f32 1e-05, %v655_v36 }
 0x834   :  { %1461 = vrsqrt.f32 %v657_v37  ;;  %vm665_vm4 = vweird.f32 %v657_v37 }
 0x837   :  { %v1460_v38 = vpop.eup %1459 }
 0x838   :  { %v586_v39 = vadd.f32 1.0, %v1460_v38 }
 0x83a   :  { %v1462_v40 = vpop.eup %1461  ;;  %v588_v41 = vmul.f32 0.5, %v586_v39 }
 0x83b   :  { %v660_v42 = vmul.f32 %v1462_v40, %v657_v37  ;;  %vm666_vm3 = vweird.f32 %v1462_v40 }
 0x83c   :  { %v590_v43 = vmul.f32 %v588_v41, %v571_v26  ;;  %vm667_vm5 = vmor %vm665_vm4, %vm666_vm3 }
 0x83d   :  { %v661_v44 = vmul.f32 %v1462_v40, %v660_v42 }
 0x83e   :  { %1354 = vmatmul.msk.f32.gmra.mxu2 %vm603_vm14, %v590_v43 }
 0x83f   :  { %v662_v45 = vmul.f32 0.5, %v661_v44 }
 0x841   :  { %v663_v46 = vsub.f32 1.5, %v662_v45 }
 0x843   :  { %v664_v47 = vmul.f32 %v1462_v40, %v663_v46 }
 0x845   :  { %v668_v49 = vsel %vm667_vm5, %v1462_v40, %v664_v47 }
 0x846   :  { %v679_v51 = vmul.f32 %v668_v49, %v645_v20 }
 0x848   :  { %v684_v54 = vmul.f32 %v1421_v48, %v679_v51 }
 0x84a   :  { %v1838_v55 = vadd.f32 %v1422_v53, %v684_v54 }
 0x84c   :  { %1360 = vmatmul.msk.f32.vlgmr.msra.gmra.mxu1 %vm65_vm0, %v1838_v55 }
 0x8c1   :  { %v630_v56 = vpop.f32.mrf.mxu2 }
 0x8c2   :  { %v631_v57 = vadd.f32 %v1808_v0, %v630_v56 }
 0x8c4   :  { %v634_v52 = vadd.f32 %v631_v57, %v535_v17 }
 0x8c6   :  { %v640_v58 = vsel %vm65_vm0, %v634_v52, 0.0 }
 0x8c7   :  { %641 = vadd.xlane.f32.xlu1 %v640_v58 }
 0x8c9   :  { %v724_v60 = vpop.f32.mrf.mxu1 }
 0x8ca   :  { %v1847_v62 = vadd.f32 %v1423_v59, %v724_v60 }
 0x8cc   :  { %731 = vrot.lane.b32.xlu2 %v1847_v62, %s1521_s19 }
 0x926   :  { %v732_v63 = vpop.permute.xlu2 %731 }
 0x927   :  { %1362 = vmatpush.xpose.msk.msrb.mxu3 %vm168_vm8, %v732_v63 }
 0x92a   :  { %1363 = vmatmul.msk.f32.vlgmr.msrb.gmra.mxu3 %vm168_vm8, %v1847_v62 }
 0x93a   :  { %v642_v0 = vpop.xlane.xlu1 %641 }
 0x93b   :  { %v644_v1 = vmul.f32 %v642_v0, %v1630_v10 }
 0x93d   :  { %v646_v2 = vsub.f32 %v634_v52, %v644_v1 }
 0x93f   :  { %v648_v3 = vmul.f32 %v646_v2, %v646_v2 }
 0x941   :  { %v652_v4 = vsel %vm65_vm0, %v648_v3, 0.0 }
 0x942   :  { %653 = vadd.xlane.f32.xlu1 %v652_v4 }
 0x95b   :  { %797 = vrot.lane.b32.xlu1 %v1847_v62, %s1522_s1 }
 0x963   :  { %768 = vrot.lane.b32.xlu1 %v1847_v62, %s1523_s2 }
 0x9ad   :  { %v754_v5 = vpop.f32.mrf.mxu3 }
 0x9ae   :  { %v755_v6 = vadd.f32 %v754_v5, %v1677_v61 }
 0x9b0   :  { %v757_v7 = vsel %vm193_vm9, %v755_v6, -inf }
 0x9b1   :  { %758 = vmax.xlane.f32.xlu0 %v757_v7 }
 0x9b5   :  { %v654_v8 = vpop.xlane.xlu1 %653 }
 0x9b6   :  { %v656_v9 = vmul.f32 %v654_v8, %v1630_v10 }
 0x9b8   :  { %v658_v11 = vadd.f32 1e-05, %v656_v9 }
 0x9ba   :  { %1463 = vrsqrt.f32 %v658_v11  ;;  %vm675_vm7 = vweird.f32 %v658_v11 }
 0x9c0   :  { %v1464_v50 = vpop.eup %1463 }
 0x9c1   :  { %v670_v12 = vmul.f32 %v1464_v50, %v658_v11  ;;  %vm676_vm6 = vweird.f32 %v1464_v50 }
 0x9c2   :  { %vm677_vm11 = vmor %vm675_vm7, %vm676_vm6 }
 0x9c3   :  { %v671_v13 = vmul.f32 %v1464_v50, %v670_v12 }
 0x9c5   :  { %v672_v14 = vmul.f32 0.5, %v671_v13  ;;  %795 = vrot.lane.b32.xlu0 %v1847_v62, %s1520_s3  ;;  %v1377_v13 = vld [vmem:[%s2028_s6 + $0x38] sm:$0xff] }
 0x9c7   :  { %v673_v15 = vsub.f32 1.5, %v672_v14  ;;  %v1376_v14 = vld [vmem:[%s2028_s6 + $0x30] sm:$0xff] }
 0x9c9   :  { %v674_v16 = vmul.f32 %v1464_v50, %v673_v15  ;;  %v1375_v15 = vld [vmem:[%s2028_s6 + $0x28] sm:$0xff] }
 0x9cb   :  { %v678_v17 = vsel %vm677_vm11, %v1464_v50, %v674_v16  ;;  %v1374_v16 = vld [vmem:[%s2028_s6 + $0x20] sm:$0xff] }
 0x9cc   :  { %v680_v18 = vmul.f32 %v678_v17, %v646_v2 }
 0x9cd   :  { %v798_v19 = vpop.permute.xlu1 %797 }
 0x9ce   :  { %1365 = vmatpush.xpose.msk.msrb.mxu1 %vm168_vm8, %v798_v19  ;;  %v685_v20 = vmul.f32 %v1421_v48, %v680_v18 }
 0x9d0   :  { %v1866_v21 = vadd.f32 %v1422_v53, %v685_v20 }
 0x9d2   :  { %1361 = vmatmul.msk.f32.gmra.mxu1 %vm65_vm0, %v1866_v21 }
 0x9d5   :  { %v769_v22 = vpop.permute.xlu1 %768 }
 0x9d6   :  { %789 = vmatpush.msrb.mxu0 %v769_v22 }
 0xa24   :  { %v759_v24 = vpop.xlane.xlu0 %758 }
 0xa25   :  { %v760_v25 = vsub.f32 %v755_v6, %v759_v24 }
 0xa27   :  { %v761_v26 = vmul.f32 1.442695, %v760_v25  ;;  %v1424_v25 = vld [vmem:[%s2029_s7 + $0x1] ss:$0 sm:$0xff]  ;;  %s1326_s7 = sshll.u32 %s2040_s18, 4  ;;  %s1327_s7 = int_to_ptr.hbm [resolvable:$true] %s1326_s7 }
 0xa29   :  { %1465 = vpow2.f32 %v761_v26 }
 0xa2f   :  { %v1466_v27 = vpop.eup %1465 }
 0xa30   :  { %v763_v28 = vsel %vm193_vm9, %v1466_v27, 0.0 }
 0xa31   :  { %764 = vadd.xlane.f32.xlu0 %v763_v28 }
 0xa37   :  { %v796_v29 = vpop.permute.xlu0 %795 }
 0xa38   :  { %1366 = vmatmul.msk.f32.vlgmr.msrb.gmra.mxu1 %vm168_vm8, %v796_v29 }
 0xa4f   :  { %v727_v30 = vpop.f32.mrf.mxu1 }
 0xa50   :  { %v728_v31 = vadd.f32 %v1423_v59, %v727_v30 }
 0xa52   :  { %932 = vrot.lane.b32.xlu2 %v728_v31, %s1522_s1 }
 0xa5a   :  { %930 = vrot.lane.b32.xlu2 %v728_v31, %s1520_s3 }
 0xa62   :  { %866 = vrot.lane.b32.xlu2 %v728_v31, %s1521_s19 }
 0xaa4   :  { %v765_v32 = vpop.xlane.xlu0 %764 }
 0xaa5   :  { %1467 = vrcp.f32 %v765_v32 }
 0xaab   :  { %v1468_v33 = vpop.eup %1467 }
 0xaac   :  { %v767_v34 = vmul.f32 %v1468_v33, %v1466_v27  ;;  %v933_v35 = vpop.permute.xlu2 %932 }
 0xaad   :  { %1371 = vmatpush.xpose.msk.msra.mxu1 %vm168_vm8, %v933_v35 }
 0xaae   :  { %1364 = vmatmul.msk.f32.vlgmr.msrb.gmra.mxu0 %vm193_vm9, %v767_v34 }
 0xab4   :  { %v931_v36 = vpop.permute.xlu2 %930 }
 0xab5   :  { %v820_v37 = vpop.f32.mrf.mxu1  ;;  %1372 = vmatmul.msk.f32.vlgmr.msra.gmra.mxu1 %vm168_vm8, %v931_v36 }
 0xab6   :  { %v821_v38 = vadd.f32 %v820_v37, %v1677_v61 }
 0xab8   :  { %v823_v39 = vsel %vm193_vm9, %v821_v38, -inf }
 0xab9   :  { %824 = vmax.xlane.f32.xlu1 %v823_v39 }
 0xabc   :  { %v867_v40 = vpop.permute.xlu2 %866 }
 0xabd   :  { %1368 = vmatpush.xpose.msk.msra.mxu0 %vm168_vm8, %v867_v40 }
 0xac0   :  { %1369 = vmatmul.msk.f32.vlgmr.msra.gmra.mxu0 %vm168_vm8, %v728_v31 }
 0xac1   :  { %1030 = vmatpush.msrb.mxu0 %v1377_v13  ;;  %v1395_v13 = vld [vmem:[%s2034_s12 + $0x68] sm:$0xff] }
 0xac3   :  { %1031 = vmatpush.msrb.mxu0 %v1376_v14  ;;  %v1394_v14 = vld [vmem:[%s2034_s12 + $0x60] sm:$0xff] }
 0xac5   :  { %1032 = vmatpush.msrb.mxu0 %v1375_v15  ;;  %v1393_v15 = vld [vmem:[%s2034_s12 + $0x58] sm:$0xff] }
 0xac7   :  { %1033 = vmatpush.msrb.mxu0 %v1374_v16  ;;  %v1392_v16 = vld [vmem:[%s2034_s12 + $0x50] sm:$0xff] }
 0xb2b   :  { %v791_v41 = vpop.f32.mrf.mxu0 }
 0xb2c   :  { %794 = vst.msk [vmem:[#allocation2] sm:$0xff] %vm168_vm8, %v791_v41  ;;  %v825_v42 = vpop.xlane.xlu1 %824 }
 0xb2d   :  { %v826_v43 = vsub.f32 %v821_v38, %v825_v42 }
 0xb2f   :  { %v827_v44 = vmul.f32 1.442695, %v826_v43  ;;  %v1385_v43 = vld [vmem:[%s2032_s10 + $0x30] sm:$0xff] }
 0xb31   :  { %1469 = vpow2.f32 %v827_v44  ;;  %v1384_v44 = vld [vmem:[%s2032_s10 + $0x28] sm:$0xff] }
 0xb32   :  { %v955_v45 = vpop.f32.mrf.mxu1 }
 0xb33   :  { %v956_v46 = vadd.f32 %v955_v45, %v1700_v23  ;;  %v1383_v45 = vld [vmem:[%s2032_s10 + $0x20] sm:$0xff] }
 0xb35   :  { %v958_v61 = vsel %vm193_vm9, %v956_v46, -inf }
 0xb36   :  { %959 = vmax.xlane.f32.xlu2 %v958_v61 }
 0xb37   :  { %v1470_v47 = vpop.eup %1469 }
 0xb38   :  { %v829_v48 = vsel %vm193_vm9, %v1470_v47, 0.0 }
 0xb39   :  { %830 = vadd.xlane.f32.xlu0 %v829_v48 }
 0xb3d   :  { %v889_v49 = vpop.f32.mrf.mxu0 }
 0xb3e   :  { %v890_v51 = vadd.f32 %v889_v49, %v1700_v23 }
 0xb40   :  { %v892_v53 = vsel %vm193_vm9, %v890_v51, -inf }
 0xb41   :  { %893 = vmax.xlane.f32.xlu0 %v892_v53 }
 0xb4e   :  { %834 = vrot.lane.b32.xlu2 %v1847_v62, %s1524_s23 }
 0xb55   :  { %969 = vrot.lane.b32.xlu0 %v728_v31, %s1524_s23 }
 0xba9   :  { %v960_v54 = vpop.xlane.xlu2 %959 }
 0xbaa   :  { %v961_v56 = vsub.f32 %v956_v46, %v960_v54 }
 0xbac   :  { %v962_v57 = vmul.f32 1.442695, %v961_v56  ;;  %v831_v52 = vpop.xlane.xlu0 %830 }
 0xbad   :  { %1471 = vrcp.f32 %v831_v52 }
 0xbae   :  { %1473 = vpow2.f32 %v962_v57  ;;  %v1425_v57 = vld [vmem:[%s2030_s8 + $0x1] ss:$0 sm:$0xff] }
 0xbb1   :  { %v835_v58 = vpop.permute.xlu2 %834 }
 0xbb2   :  { %855 = vmatpush.msra.mxu3 %v835_v58 }
 0xbb3   :  { %v1472_v59 = vpop.eup %1471 }
 0xbb4   :  { %v1474_v60 = vpop.eup %1473  ;;  %v833_v63 = vmul.f32 %v1472_v59, %v1470_v47  ;;  %v894_v23 = vpop.xlane.xlu0 %893  ;;  %v1426_v59 = vld [vmem:[%s2031_s9 + $0x1] ss:$0 sm:$0xff] }
 0xbb5   :  { %v895_v0 = vsub.f32 %v890_v51, %v894_v23  ;;  %v964_v1 = vsel %vm193_vm9, %v1474_v60, 0.0 }
 0xbb6   :  { %965 = vadd.xlane.f32.xlu1 %v964_v1  ;;  %1367 = vmatmul.msk.f32.vlgmr.msra.gmra.mxu3 %vm193_vm9, %v833_v63 }
 0xbb7   :  { %v896_v62 = vmul.f32 1.442695, %v895_v0 }
 0xbb9   :  { %1475 = vpow2.f32 %v896_v62 }
 0xbbf   :  { %v1476_v2 = vpop.eup %1475 }
 0xbc0   :  { %v898_v3 = vsel %vm193_vm9, %v1476_v2, 0.0 }
 0xbc1   :  { %899 = vadd.xlane.f32.xlu1 %v898_v3 }
 0xbc7   :  { %v970_v4 = vpop.permute.xlu0 %969 }
 0xbc8   :  { %990 = vmatpush.msrb.mxu3 %v970_v4 }
 0xbda   :  { %903 = vrot.lane.b32.xlu1 %v728_v31, %s1523_s2 }
 0xc29   :  { %v966_v5 = vpop.xlane.xlu1 %965 }
 0xc2a   :  { %1477 = vrcp.f32 %v966_v5 }
 0xc30   :  { %v1478_v6 = vpop.eup %1477 }
 0xc31   :  { %v968_v7 = vmul.f32 %v1478_v6, %v1474_v60 }
 0xc33   :  { %1373 = vmatmul.msk.f32.vlgmr.msrb.gmra.mxu3 %vm193_vm9, %v968_v7 }
 0xc34   :  { %v900_v9 = vpop.xlane.xlu1 %899 }
 0xc35   :  { %1479 = vrcp.f32 %v900_v9 }
 0xc39   :  { %v857_v8 = vpop.f32.mrf.mxu3 }
 0xc3a   :  { %861 = vrot.lane.b32.xlu0 %v857_v8, %s1525_s24 }
 0xc3b   :  { %v1480_v11 = vpop.eup %1479 }
 0xc3c   :  { %v902_v50 = vmul.f32 %v1480_v11, %v1476_v2 }
 0xc4c   :  { %v904_v12 = vpop.permute.xlu1 %903 }
 0xc4d   :  { %924 = vmatpush.msra.mxu2 %v904_v12  ;;  %v1396_v12 = vld [vmem:[%s2034_s12 + $0x70] sm:$0xff] }
 0xc4e   :  { %1370 = vmatmul.msk.f32.vlgmr.msra.gmra.mxu2 %vm193_vm9, %v902_v50  ;;  %v1397_v50 = vld [vmem:[%s2034_s12 + $0x78] sm:$0xff] }
 0xc4f   :  { %1186 = vmatpush.msrb.mxu1 %v1397_v50  ;;  %v1429_v50 = vld [vmem:[%s2036_s14 + $0x1] ss:$0 sm:$0xff] }
 0xc51   :  { %1187 = vmatpush.msrb.mxu1 %v1396_v12 }
 0xc53   :  { %1188 = vmatpush.msrb.mxu1 %v1395_v13 }
 0xc55   :  { %1189 = vmatpush.msrb.mxu1 %v1394_v14  ;;  %v1430_v14 = vld [vmem:[%s2037_s15 + $0x1] ss:$0 sm:$0xff] }
 0xc57   :  { %1190 = vmatpush.msrb.mxu1 %v1393_v15 }
 0xc59   :  { %1191 = vmatpush.msrb.mxu1 %v1392_v16 }
 0xcac   :  { %v862_v17 = vpop.permute.xlu0 %861 }
 0xcad   :  { %864 = vst.msk [vmem:[#allocation2] sm:$0xff] %vm301_vm10, %v862_v17  ;;  %v1391_v17 = vld [vmem:[%s2034_s12 + $0x48] sm:$0xff] }
 0xcae   :  { %1192 = vmatpush.msrb.mxu1 %v1391_v17 }
 0xcb4   :  { %v1000_v18 = vld [vmem:[#allocation2] sm:$0xff] }
 0xcb5   :  { %1379 = vmatmul.msk.f32.vlgmr.msrb.gmra.mxu0 %vm65_vm0, %v1000_v18  ;;  %v1390_v18 = vld [vmem:[%s2034_s12 + $0x40] sm:$0xff] }
 0xcb6   :  { %v992_v19 = vpop.f32.mrf.mxu3  ;;  %1193 = vmatpush.msrb.mxu1 %v1390_v18 }
 0xcb7   :  { %996 = vrot.lane.b32.xlu2 %v992_v19, %s1525_s24  ;;  %v1427_v19 = vld [vmem:[%s2033_s11 + $0x1] ss:$0 sm:$0xff] }
 0xcd1   :  { %v926_v20 = vpop.f32.mrf.mxu2 }
 0xcd2   :  { %929 = vst.msk [vmem:[#allocation2 + $0x8] sm:$0xff] %vm168_vm8, %v926_v20 }
 0xd11   :  { %v997_v22 = vpop.permute.xlu2 %996 }
 0xd12   :  { %999 = vst.msk [vmem:[#allocation2 + $0x8] sm:$0xff] %vm301_vm10, %v997_v22 }
 0xd19   :  { %v1001_v24 = vld [vmem:[#allocation2 + $0x8] sm:$0xff] }
 0xd1a   :  { %1380 = vmatmul.msk.f32.gmra.mxu0 %vm65_vm0, %v1001_v24 }
 0xd32   :  { %v1035_v26 = vpop.f32.mrf.mxu0 }
 0xd33   :  { %v1036_v27 = vadd.f32 %v1424_v25, %v1035_v26 }
 0xd35   :  { %v1041_v28 = vadd.f32 %v1036_v27, %v1838_v55 }
 0xd37   :  { %v1047_v29 = vsel %vm65_vm0, %v1041_v28, 0.0 }
 0xd38   :  { %1048 = vadd.xlane.f32.xlu0 %v1047_v29 }
 0xd97   :  { %v1038_v30 = vpop.f32.mrf.mxu0 }
 0xd98   :  { %v1039_v31 = vadd.f32 %v1424_v25, %v1038_v30 }
 0xd9a   :  { %v1042_v32 = vadd.f32 %v1039_v31, %v1866_v21  ;;  %v1386_v21 = vld [vmem:[%s2032_s10 + $0x38] sm:$0xff] }
 0xd9b   :  { %1129 = vmatpush.msrb.mxu2 %v1386_v21  ;;  %v1428_v21 = vld [vmem:[%s2035_s13 + $0x1] ss:$0 sm:$0xff] }
 0xd9c   :  { %v1050_v33 = vsel %vm65_vm0, %v1042_v32, 0.0 }
 0xd9d   :  { %1051 = vadd.xlane.f32.xlu2 %v1050_v33  ;;  %1130 = vmatpush.msrb.mxu2 %v1385_v43 }
 0xd9f   :  { %1131 = vmatpush.msrb.mxu2 %v1384_v44 }
 0xda1   :  { %1132 = vmatpush.msrb.mxu2 %v1383_v45 }
 0xdab   :  { %v1049_v34 = vpop.xlane.xlu0 %1048 }
 0xdac   :  { %v1053_v35 = vmul.f32 %v1049_v34, %v1630_v10 }
 0xdae   :  { %v1055_v36 = vsub.f32 %v1041_v28, %v1053_v35 }
 0xdb0   :  { %v1057_v37 = vmul.f32 %v1055_v36, %v1055_v36 }
 0xdb2   :  { %v1059_v38 = vsel %vm65_vm0, %v1057_v37, 0.0 }
 0xdb3   :  { %1060 = vadd.xlane.f32.xlu1 %v1059_v38 }
 0xe10   :  { %v1052_v39 = vpop.xlane.xlu2 %1051 }
 0xe11   :  { %v1054_v55 = vmul.f32 %v1052_v39, %v1630_v10 }
 0xe13   :  { %v1056_v40 = vsub.f32 %v1042_v32, %v1054_v55 }
 0xe15   :  { %v1058_v41 = vmul.f32 %v1056_v40, %v1056_v40 }
 0xe17   :  { %v1062_v42 = vsel %vm65_vm0, %v1058_v41, 0.0 }
 0xe18   :  { %1063 = vadd.xlane.f32.xlu2 %v1062_v42 }
 0xe26   :  { %v1061_v46 = vpop.xlane.xlu1 %1060 }
 0xe27   :  { %v1065_v61 = vmul.f32 %v1061_v46, %v1630_v10 }
 0xe29   :  { %v1067_v47 = vadd.f32 1e-05, %v1065_v61 }
 0xe2b   :  { %1481 = vrsqrt.f32 %v1067_v47  ;;  %vm1075_vm9 = vweird.f32 %v1067_v47 }
 0xe31   :  { %v1482_v48 = vpop.eup %1481 }
 0xe32   :  { %v1070_v49 = vmul.f32 %v1482_v48, %v1067_v47  ;;  %vm1076_vm8 = vweird.f32 %v1482_v48 }
 0xe33   :  { %vm1077_vm10 = vmor %vm1075_vm9, %vm1076_vm8 }
 0xe34   :  { %v1071_v51 = vmul.f32 %v1482_v48, %v1070_v49 }
 0xe36   :  { %v1072_v53 = vmul.f32 0.5, %v1071_v51 }
 0xe38   :  { %v1073_v54 = vsub.f32 1.5, %v1072_v53 }
 0xe3a   :  { %v1074_v56 = vmul.f32 %v1482_v48, %v1073_v54 }
 0xe3c   :  { %v1078_v52 = vsel %vm1077_vm10, %v1482_v48, %v1074_v56 }
 0xe3d   :  { %v1089_v58 = vmul.f32 %v1078_v52, %v1055_v36 }
 0xe3f   :  { %v1094_v60 = vmul.f32 %v1425_v57, %v1089_v58 }
 0xe41   :  { %v1946_v63 = vadd.f32 %v1426_v59, %v1094_v60 }
 0xe43   :  { %1388 = vmatmul.msk.f32.vlgmr.msrb.gmra.mxu2 %vm65_vm0, %v1946_v63 }
 0xe8b   :  { %v1064_v23 = vpop.xlane.xlu2 %1063 }
 0xe8c   :  { %v1066_v0 = vmul.f32 %v1064_v23, %v1630_v10  ;;  %v1264_v23 = vld [vmem:[%s2038_s16 + $0x18] sm:$0xff] }
 0xe8d   :  { %1281 = vmatpush.msra.mxu3 %v1264_v23 }
 0xe8e   :  { %v1068_v1 = vadd.f32 1e-05, %v1066_v0  ;;  %v1263_v0 = vld [vmem:[%s2038_s16 + $0x10] sm:$0xff] }
 0xe8f   :  { %1282 = vmatpush.msra.mxu3 %v1263_v0 }
 0xe90   :  { %1483 = vrsqrt.f32 %v1068_v1  ;;  %vm1085_vm13 = vweird.f32 %v1068_v1 }
 0xe96   :  { %v1484_v62 = vpop.eup %1483 }
 0xe97   :  { %v1080_v2 = vmul.f32 %v1484_v62, %v1068_v1  ;;  %vm1086_vm12 = vweird.f32 %v1484_v62  ;;  %v1262_v1 = vld [vmem:[%s2038_s16 + $0x8] sm:$0xff] }
 0xe98   :  { %vm1087_vm15 = vmor %vm1085_vm13, %vm1086_vm12  ;;  %1283 = vmatpush.msra.mxu3 %v1262_v1 }
 0xe99   :  { %v1081_v3 = vmul.f32 %v1484_v62, %v1080_v2 }
 0xe9b   :  { %v1082_v4 = vmul.f32 0.5, %v1081_v3 }
 0xe9d   :  { %v1083_v5 = vsub.f32 1.5, %v1082_v4 }
 0xe9f   :  { %v1084_v6 = vmul.f32 %v1484_v62, %v1083_v5 }
 0xea1   :  { %v1088_v7 = vsel %vm1087_vm15, %v1484_v62, %v1084_v6  ;;  %v1261_v62 = vld [vmem:[%s2038_s16] sm:$0xff] }
 0xea2   :  { %v1090_v8 = vmul.f32 %v1088_v7, %v1056_v40  ;;  %1284 = vmatpush.msra.mxu3 %v1261_v62 }
 0xea4   :  { %v1095_v9 = vmul.f32 %v1425_v57, %v1090_v8  ;;  %1310 = vmatpush.msrb.mxu3 %v1264_v23 }
 0xea6   :  { %v1100_v11 = vadd.f32 %v1426_v59, %v1095_v9  ;;  %1311 = vmatpush.msrb.mxu3 %v1263_v0 }
 0xea8   :  { %1389 = vmatmul.msk.f32.gmra.mxu2 %vm65_vm0, %v1100_v11  ;;  %1312 = vmatpush.msrb.mxu3 %v1262_v1 }
 0xeaa   :  { %1313 = vmatpush.msrb.mxu3 %v1261_v62 }
 0xec6   :  { %v1134_v20 = vpop.f32.mrf.mxu2 }
 0xec7   :  { %v1135_v22 = vadd.f32 %v1427_v19, %v1134_v20 }
 0xec9   :  { %v1140_v24 = vmul.f32 %v1135_v22, %v1135_v22 }
 0xecb   :  { %v1142_v25 = vmul.f32 %v1140_v24, %v1135_v22 }
 0xecd   :  { %v1144_v26 = vmul.f32 0.044715, %v1142_v25 }
 0xecf   :  { %v1146_v27 = vadd.f32 %v1144_v26, %v1135_v22 }
 0xed1   :  { %v1148_v28 = vmul.f32 0.7978846, %v1146_v27 }
 0xed3   :  { %1485 = vtanh.f32 %v1148_v28 }
 0xed9   :  { %v1486_v29 = vpop.eup %1485 }
 0xeda   :  { %v1152_v30 = vadd.f32 1.0, %v1486_v29 }
 0xedc   :  { %v1154_v31 = vmul.f32 0.5, %v1152_v30 }
 0xede   :  { %v1156_v32 = vmul.f32 %v1154_v31, %v1135_v22 }
 0xee0   :  { %1399 = vmatmul.msk.f32.vlgmr.msrb.gmra.mxu1 %vm603_vm14, %v1156_v32 }
 0xf2b   :  { %v1137_v33 = vpop.f32.mrf.mxu2 }
 0xf2c   :  { %v1138_v34 = vadd.f32 %v1427_v19, %v1137_v33 }
 0xf2e   :  { %v1141_v35 = vmul.f32 %v1138_v34, %v1138_v34 }
 0xf30   :  { %v1143_v36 = vmul.f32 %v1141_v35, %v1138_v34 }
 0xf32   :  { %v1145_v37 = vmul.f32 0.044715, %v1143_v36 }
 0xf34   :  { %v1147_v38 = vadd.f32 %v1145_v37, %v1138_v34 }
 0xf36   :  { %v1149_v39 = vmul.f32 0.7978846, %v1147_v38 }
 0xf38   :  { %1487 = vtanh.f32 %v1149_v39 }
 0xf3e   :  { %v1488_v55 = vpop.eup %1487 }
 0xf3f   :  { %v1153_v40 = vadd.f32 1.0, %v1488_v55 }
 0xf41   :  { %v1155_v41 = vmul.f32 0.5, %v1153_v40 }
 0xf43   :  { %v1157_v42 = vmul.f32 %v1155_v41, %v1138_v34  ;;  %v1294_v34 = vld [vmem:[%s2039_s17] sm:$0x1] }
 0xf45   :  { %1400 = vmatmul.msk.f32.gmra.mxu1 %vm603_vm14, %v1157_v42 }
 0xf5d   :  { %v1195_v43 = vpop.f32.mrf.mxu1 }
 0xf5e   :  { %v1196_v44 = vadd.f32 %v1428_v21, %v1195_v43 }
 0xf60   :  { %v1201_v45 = vadd.f32 %v1196_v44, %v1946_v63 }
 0xf62   :  { %v1207_v46 = vsel %vm65_vm0, %v1201_v45, 0.0 }
 0xf63   :  { %1208 = vadd.xlane.f32.xlu0 %v1207_v46 }
 0xfc2   :  { %v1198_v61 = vpop.f32.mrf.mxu1 }
 0xfc3   :  { %v1199_v47 = vadd.f32 %v1428_v21, %v1198_v61 }
 0xfc5   :  { %v1202_v48 = vadd.f32 %v1199_v47, %v1100_v11 }
 0xfc7   :  { %v1210_v49 = vsel %vm65_vm0, %v1202_v48, 0.0 }
 0xfc8   :  { %1211 = vadd.xlane.f32.xlu1 %v1210_v49 }
 0xfd6   :  { %v1209_v51 = vpop.xlane.xlu0 %1208 }
 0xfd7   :  { %v1213_v53 = vmul.f32 %v1209_v51, %v1630_v10 }
 0xfd9   :  { %v1215_v54 = vsub.f32 %v1201_v45, %v1213_v53 }
 0xfdb   :  { %v1217_v56 = vmul.f32 %v1215_v54, %v1215_v54 }
 0xfdd   :  { %v1219_v57 = vsel %vm65_vm0, %v1217_v56, 0.0 }
 0xfde   :  { %1220 = vadd.xlane.f32.xlu2 %v1219_v57 }
0x103b   :  { %v1212_v52 = vpop.xlane.xlu1 %1211 }
0x103c   :  { %v1214_v58 = vmul.f32 %v1212_v52, %v1630_v10 }
0x103e   :  { %v1216_v59 = vsub.f32 %v1202_v48, %v1214_v58 }
0x1040   :  { %v1218_v60 = vmul.f32 %v1216_v59, %v1216_v59 }
0x1042   :  { %v1222_v63 = vsel %vm65_vm0, %v1218_v60, 0.0 }
0x1043   :  { %1223 = vadd.xlane.f32.xlu0 %v1222_v63 }
0x1051   :  { %v1221_v2 = vpop.xlane.xlu2 %1220 }
0x1052   :  { %v1225_v3 = vmul.f32 %v1221_v2, %v1630_v10 }
0x1054   :  { %v1227_v4 = vadd.f32 1e-05, %v1225_v3 }
0x1056   :  { %1489 = vrsqrt.f32 %v1227_v4  ;;  %vm1235_vm1 = vweird.f32 %v1227_v4 }
0x105c   :  { %v1490_v5 = vpop.eup %1489 }
0x105d   :  { %v1230_v6 = vmul.f32 %v1490_v5, %v1227_v4  ;;  %vm1236_vm14 = vweird.f32 %v1490_v5 }
0x105e   :  { %vm1237_vm2 = vmor %vm1235_vm1, %vm1236_vm14 }
0x105f   :  { %v1231_v7 = vmul.f32 %v1490_v5, %v1230_v6 }
0x1061   :  { %v1232_v8 = vmul.f32 0.5, %v1231_v7 }
0x1063   :  { %v1233_v9 = vsub.f32 1.5, %v1232_v8 }
0x1065   :  { %v1234_v11 = vmul.f32 %v1490_v5, %v1233_v9 }
0x1067   :  { %v1238_v12 = vsel %vm1237_vm2, %v1490_v5, %v1234_v11 }
0x1068   :  { %v1249_v13 = vmul.f32 %v1238_v12, %v1215_v54 }
0x106a   :  { %v1254_v15 = vmul.f32 %v1429_v50, %v1249_v13 }
0x106c   :  { %v1259_v16 = vadd.f32 %v1430_v14, %v1254_v15 }
0x106e   :  { %1403 = vmatmul.msk.f32.vlgmr.msra.gmra.mxu3 %vm65_vm0, %v1259_v16 }
0x10b6   :  { %v1224_v17 = vpop.xlane.xlu0 %1223 }
0x10b7   :  { %v1226_v18 = vmul.f32 %v1224_v17, %v1630_v10  ;;  %v1265_v10 = vld [vmem:[%s2039_s17] sm:$0x1] }
0x10b9   :  { %v1228_v19 = vadd.f32 1e-05, %v1226_v18 }
0x10bb   :  { %1491 = vrsqrt.f32 %v1228_v19  ;;  %vm1245_vm4 = vweird.f32 %v1228_v19 }
0x10c1   :  { %v1492_v20 = vpop.eup %1491 }
0x10c2   :  { %v1240_v22 = vmul.f32 %v1492_v20, %v1228_v19  ;;  %vm1246_vm3 = vweird.f32 %v1492_v20 }
0x10c3   :  { %vm1247_vm5 = vmor %vm1245_vm4, %vm1246_vm3 }
0x10c4   :  { %v1241_v24 = vmul.f32 %v1492_v20, %v1240_v22 }
0x10c6   :  { %v1242_v25 = vmul.f32 0.5, %v1241_v24 }
0x10c8   :  { %v1243_v26 = vsub.f32 1.5, %v1242_v25 }
0x10ca   :  { %v1244_v27 = vmul.f32 %v1492_v20, %v1243_v26 }
0x10cc   :  { %v1248_v28 = vsel %vm1247_vm5, %v1492_v20, %v1244_v27 }
0x10cd   :  { %v1250_v29 = vmul.f32 %v1248_v28, %v1216_v59 }
0x10cf   :  { %v1255_v30 = vmul.f32 %v1429_v50, %v1250_v29 }
0x10d1   :  { %v1260_v31 = vadd.f32 %v1430_v14, %v1255_v30 }
0x10d3   :  { %1404 = vmatmul.msk.f32.vlgmr.msrb.gmra.mxu3 %vm65_vm0, %v1260_v31 }
0x10f1   :  { %v1286_v32 = vpop.f32.mrf.mxu3 }
0x10f2   :  { %v1287_v33 = vadd.f32 %v1286_v32, %v1265_v10 }
0x10f4   :  { %1289 = vst [vmem:[#allocation3] sm:$0x1] %v1287_v33 }
0x1156   :  { %v1315_v35 = vpop.f32.mrf.mxu3 }
0x1157   :  { %v1316_v36 = vadd.f32 %v1315_v35, %v1294_v34 }
0x1159   :  { %1318 = vst [vmem:[#allocation3 + $0x1] sm:$0x1] %v1316_v36 }
0x115a   :  { %1329 = dma.vmem_to_hbm [thread:$0]  %s1325_s0, 32, %s1327_s7, [#allocation4]  }
0x115b   :  { %1517 = dma.done.wait [#allocation4], 32  }
0x115c   :  { %1518 = vsyncadd [#allocation4], 4294967264 }
0x115d   :  { %1334 = vsyncpa [#allocation4], 1 }

</bundles_post_ra>
